<compile_context>
chip_gen: v7x
topology: tpu7x:2x2x1
jax: 0.10.0
libtpu: 0.0.40
codegen_flags: <defaults>
</compile_context>

<pallas_src>
import functools

import jax
import jax.numpy as jnp
from jax.experimental import pallas as pl
from jax.experimental.pallas import tpu as pltpu


def _round_up(v, m):
    return -(-v // m) * m


# ----------------------------- Pallas kernel ---------------------------------
def _neural_process_kernel(
    x_t_ref,                        # [x_dim, TM]  bf16 (rows on the lane axis)
    ew1, eb1, ew2, eb2,             # x_encoder params: w_t [out,in] bf16, b_t [out,1] f32
    dw0, db0, dw1, db1,             # decoder hidden params
    dw2, db2, dw3, db3,
    dwo, dbo,                       # fused loc|scale head: [2*y_dim, r_dim] bf16, [2*y_dim,1] f32
    out_ref,                        # [2*y_dim, TM] f32 ; rows [0, y_dim) = loc, rest = scale
    *,
    y_dim,
):
    f32 = jnp.float32
    bf16 = jnp.bfloat16

    def dense_t(w_ref, h_t, b_ref, relu):
        # Transposed orientation: z[o, m] = sum_k W_t[o, k] * h_t[k, m] + b[o].
        # bf16 MXU matmul, f32 accumulation, f32 bias/ReLU; no transposes anywhere.
        z = jnp.dot(w_ref[...], h_t, preferred_element_type=f32) + b_ref[...]
        if relu:
            z = jnp.maximum(z, 0.0)
        # NOTE(intentional): activations are re-quantized to bf16 between layers
        # for bf16 MXU throughput; the reference below mirrors this.
        return z.astype(bf16)

    x_t = x_t_ref[...]

    # --- x_encoder: Linear -> ReLU -> Linear ---
    h = dense_t(ew1, x_t, eb1, relu=True)
    h = dense_t(ew2, h, eb2, relu=False)

    # --- decoder: 4 x (Linear -> ReLU) ---
    h = dense_t(dw0, h, db0, relu=True)
    h = dense_t(dw1, h, db1, relu=True)
    h = dense_t(dw2, h, db2, relu=True)
    h = dense_t(dw3, h, db3, relu=True)

    # --- fused loc/scale head, f32 epilogue, lane-dense output [2*y_dim, TM] ---
    out_t = jnp.dot(dwo[...], h, preferred_element_type=f32) + dbo[...]

    # p_y_loc_transformer = Identity ; p_y_scale_transformer = 0.01 + 0.99*softplus
    # Select per sublane-row (loc rows vs scale rows) to avoid sublane slicing.
    row = jax.lax.broadcasted_iota(jnp.int32, out_t.shape, 0)
    scale = 0.01 + 0.99 * jax.nn.softplus(out_t)
    out_ref[...] = jnp.where(row < y_dim, out_t, scale)


# ------------------------------ JAX wrapper ----------------------------------
def neural_process_forward(X_trgt, params, *, y_dim, row_tile=2048):
    """X_trgt: [B, N, x_dim] -> (loc, scale) each [1, B, N, y_dim]."""
    B, N, x_dim = X_trgt.shape
    r_dim = params["ew1"].shape[1]
    assert row_tile % 128 == 0, "row_tile must be lane-dense (multiple of 128)"

    rows = B * N
    rows_min = _round_up(max(rows, 1), 128)

    # Tile selection:
    #   * small inputs pad only to the next multiple of 128 (no full-tile waste),
    #   * if everything fits in one tile and splits evenly, use 2 blocks so the
    #     "parallel" grid axis can occupy both TensorCores on v7x,
    #   * cap at row_tile (default 2048) to amortize per-grid-step overhead.
    tile = min(row_tile, rows_min)
    if rows_min <= row_tile and rows_min % 256 == 0:
        tile = rows_min // 2
    n_blocks = -(-rows_min // tile)
    rows_padded = n_blocks * tile

    bf16, f32 = jnp.bfloat16, jnp.float32

    x_flat = X_trgt.reshape(rows, x_dim)
    x_flat = jnp.pad(x_flat, ((0, rows_padded - rows), (0, 0)))
    x_t = x_flat.T.astype(bf16)                       # [x_dim, rows_padded], rows on lanes

    # Weights pre-transposed to [out, in] (bf16 for the MXU), biases to [out, 1] (f32).
    wt = lambda name: params[name].T.astype(bf16)
    bt = lambda name: params[name].T.astype(f32)

    const = lambda shape: pl.BlockSpec(shape, lambda i: (0, 0))
    in_specs = [
        pl.BlockSpec((x_dim, tile), lambda i: (0, i)),               # x (transposed rows)
        const((r_dim, x_dim)), const((r_dim, 1)),                    # ew1_t, eb1_t
        const((r_dim, r_dim)), const((r_dim, 1)),                    # ew2_t, eb2_t
        const((r_dim, r_dim)), const((r_dim, 1)),                    # dw0_t, db0_t
        const((r_dim, r_dim)), const((r_dim, 1)),                    # dw1_t, db1_t
        const((r_dim, r_dim)), const((r_dim, 1)),                    # dw2_t, db2_t
        const((r_dim, r_dim)), const((r_dim, 1)),                    # dw3_t, db3_t
        const((2 * y_dim, r_dim)), const((2 * y_dim, 1)),            # dwo_t, dbo_t
    ]
    out_specs = pl.BlockSpec((2 * y_dim, tile), lambda i: (0, i))

    # Advisory cost estimate for XLA scheduling.
    mm_flops = x_dim * r_dim + 5 * r_dim * r_dim + r_dim * 2 * y_dim
    weight_bytes = 2 * mm_flops + 4 * (6 * r_dim + 2 * y_dim)
    cost = pl.CostEstimate(
        flops=2 * rows_padded * mm_flops,
        transcendentals=2 * rows_padded * y_dim,
        bytes_accessed=(
            rows_padded * x_dim * 2                                  # x (bf16)
            + n_blocks * weight_bytes                                # resident weights/biases
            + rows_padded * 2 * y_dim * 4                            # packed output (f32)
        ),
    )

    packed = pl.pallas_call(
        functools.partial(_neural_process_kernel, y_dim=y_dim),
        out_shape=jax.ShapeDtypeStruct((2 * y_dim, rows_padded), f32),
        grid_spec=pltpu.PrefetchScalarGridSpec(
            num_scalar_prefetch=0,
            grid=(n_blocks,),
            in_specs=in_specs,
            out_specs=out_specs,
        ),
        compiler_params=pltpu.CompilerParams(
            dimension_semantics=("parallel",),
            vmem_limit_bytes=32 * 1024 * 1024,   # headroom vs v5e's 16 MiB scoped default
        ),
        cost_estimate=cost,
    )(
        x_t,
        wt("ew1"), bt("eb1"), wt("ew2"), bt("eb2"),
        wt("dw0"), bt("db0"), wt("dw1"), bt("db1"),
        wt("dw2"), bt("db2"), wt("dw3"), bt("db3"),
        wt("dwo"), bt("dbo"),
    )

    packed = packed[:, :rows]                                # drop padded rows
    loc = packed[:y_dim].T.reshape(1, B, N, y_dim)           # unsqueeze(0): n_z_samples=1
    scale = packed[y_dim:].T.reshape(1, B, N, y_dim)
    return loc, scale


# ----------------------------- parameter setup --------------------------------
def init_params(key, x_dim, y_dim, r_dim):
    """Deterministic synthetic init mirroring the module's layer shapes."""
    def linear(k, fan_in, fan_out):
        kw, kb = jax.random.split(k)
        w = jax.random.normal(kw, (fan_in, fan_out), jnp.float32) / jnp.sqrt(float(fan_in))
        b = 0.01 * jax.random.normal(kb, (1, fan_out), jnp.float32)
        return w, b

    keys = jax.random.split(key, 7)
    params = {}
    # x_encoder: MLP(x_dim, r_dim, hidden=r_dim, n_hidden_layers=1)
    params["ew1"], params["eb1"] = linear(keys[0], x_dim, r_dim)
    params["ew2"], params["eb2"] = linear(keys[1], r_dim, r_dim)
    # decoder: MLP(r_dim, 2*y_dim, hidden=r_dim, n_hidden_layers=4)
    params["dw0"], params["db0"] = linear(keys[2], r_dim, r_dim)
    params["dw1"], params["db1"] = linear(keys[3], r_dim, r_dim)
    params["dw2"], params["db2"] = linear(keys[4], r_dim, r_dim)
    params["dw3"], params["db3"] = linear(keys[5], r_dim, r_dim)
    # output layer of shape (r_dim, 2*y_dim) -> fused loc/scale head
    params["dwo"], params["dbo"] = linear(keys[6], r_dim, 2 * y_dim)
    return params


# ------------------------------ pure-JAX reference ----------------------------
def reference_forward(X_trgt, p, y_dim):
    """Pure-JAX reference mimicking the kernel's bf16 matmuls with f32 accumulation."""
    f32, bf16 = jnp.float32, jnp.bfloat16

    def lin(a, w, b):
        return jnp.dot(a.astype(bf16), w.astype(bf16), preferred_element_type=f32) + b

    h = jax.nn.relu(lin(X_trgt, p["ew1"], p["eb1"]))
    xt = lin(h, p["ew2"], p["eb2"])
    h = jax.nn.relu(lin(xt, p["dw0"], p["db0"]))
    h = jax.nn.relu(lin(h, p["dw1"], p["db1"]))
    h = jax.nn.relu(lin(h, p["dw2"], p["db2"]))
    h = jax.nn.relu(lin(h, p["dw3"], p["db3"]))
    out = lin(h, p["dwo"], p["dbo"])
    loc = out[..., :y_dim]
    scale = 0.01 + 0.99 * jax.nn.softplus(out[..., y_dim:])
    return loc[None], scale[None]


if __name__ == "__main__":
    x_dim, y_dim = 2, 1  # e.g. 2-D positions in [-1,1]^2, scalar targets
    r_dim = 128          # default representation dim
    key = jax.random.PRNGKey(0)

    # Case 1: tiny demo shape (single 128-row block; padding clamped).
    B, N = 2, 8
    k_x, k_p = jax.random.split(key)
    X_trgt = jax.random.uniform(k_x, (B, N, x_dim), jnp.float32, minval=-1.0, maxval=1.0)
    params = init_params(k_p, x_dim, y_dim, r_dim)

    loc, scale = neural_process_forward(X_trgt, params, y_dim=y_dim)
    loc, scale = jax.block_until_ready((loc, scale))

    loc_ref, scale_ref = reference_forward(X_trgt, params, y_dim)
    assert loc.shape == (1, B, N, y_dim) and scale.shape == (1, B, N, y_dim)
    assert jnp.allclose(loc, loc_ref, atol=2e-2, rtol=2e-2)
    assert jnp.allclose(scale, scale_ref, atol=2e-2, rtol=2e-2)
    assert bool(jnp.all(scale >= 0.0099))

    # Case 2: moderate shape exercising the multi-block / two-TensorCore path.
    B2, N2 = 4, 300                                     # rows=1200 -> 2 blocks of 640
    k_x2 = jax.random.fold_in(k_x, 1)
    X2 = jax.random.uniform(k_x2, (B2, N2, x_dim), jnp.float32, minval=-1.0, maxval=1.0)
    loc2, scale2 = neural_process_forward(X2, params, y_dim=y_dim)
    loc2, scale2 = jax.block_until_ready((loc2, scale2))
    loc2_ref, scale2_ref = reference_forward(X2, params, y_dim)
    assert loc2.shape == (1, B2, N2, y_dim) and scale2.shape == (1, B2, N2, y_dim)
    assert jnp.allclose(loc2, loc2_ref, atol=2e-2, rtol=2e-2)
    assert jnp.allclose(scale2, scale2_ref, atol=2e-2, rtol=2e-2)

    print("KERNEL_OK")
</pallas_src>

<mosaic_0001>
module attributes {stable_mosaic.version = 11 : i64} {
  func.func @_neural_process_kernel(%arg0: i32, %arg1: memref<2x128xbf16, #tpu.memory_space<vmem>>, %arg2: memref<128x2xbf16, #tpu.memory_space<vmem>>, %arg3: memref<128x1xf32, #tpu.memory_space<vmem>>, %arg4: memref<128x128xbf16, #tpu.memory_space<vmem>>, %arg5: memref<128x1xf32, #tpu.memory_space<vmem>>, %arg6: memref<128x128xbf16, #tpu.memory_space<vmem>>, %arg7: memref<128x1xf32, #tpu.memory_space<vmem>>, %arg8: memref<128x128xbf16, #tpu.memory_space<vmem>>, %arg9: memref<128x1xf32, #tpu.memory_space<vmem>>, %arg10: memref<128x128xbf16, #tpu.memory_space<vmem>>, %arg11: memref<128x1xf32, #tpu.memory_space<vmem>>, %arg12: memref<128x128xbf16, #tpu.memory_space<vmem>>, %arg13: memref<128x1xf32, #tpu.memory_space<vmem>>, %arg14: memref<2x128xbf16, #tpu.memory_space<vmem>>, %arg15: memref<2x1xf32, #tpu.memory_space<vmem>>, %arg16: memref<2x128xf32, #tpu.memory_space<vmem>>) attributes {dimension_semantics = [#tpu.dimension_semantics<parallel>], iteration_bounds = array<i64: 1>, scalar_prefetch = 0 : i64, scratch_operands = 0 : i64, tpu.core_type = #tpu.core_type<tc>, window_params = [{transform_indices = @transform_0, window_bounds = array<i64: 2, 128>}, {pipeline_mode = #tpu.pipeline_mode<synchronous>, transform_indices = @transform_1, window_bounds = array<i64: 128, 2>}, {pipeline_mode = #tpu.pipeline_mode<synchronous>, transform_indices = @transform_2, window_bounds = array<i64: 128, 1>}, {pipeline_mode = #tpu.pipeline_mode<synchronous>, transform_indices = @transform_3, window_bounds = array<i64: 128, 128>}, {pipeline_mode = #tpu.pipeline_mode<synchronous>, transform_indices = @transform_4, window_bounds = array<i64: 128, 1>}, {pipeline_mode = #tpu.pipeline_mode<synchronous>, transform_indices = @transform_5, window_bounds = array<i64: 128, 128>}, {pipeline_mode = #tpu.pipeline_mode<synchronous>, transform_indices = @transform_6, window_bounds = array<i64: 128, 1>}, {pipeline_mode = #tpu.pipeline_mode<synchronous>, transform_indices = @transform_7, window_bounds = array<i64: 128, 128>}, {pipeline_mode = #tpu.pipeline_mode<synchronous>, transform_indices = @transform_8, window_bounds = array<i64: 128, 1>}, {pipeline_mode = #tpu.pipeline_mode<synchronous>, transform_indices = @transform_9, window_bounds = array<i64: 128, 128>}, {pipeline_mode = #tpu.pipeline_mode<synchronous>, transform_indices = @transform_10, window_bounds = array<i64: 128, 1>}, {pipeline_mode = #tpu.pipeline_mode<synchronous>, transform_indices = @transform_11, window_bounds = array<i64: 128, 128>}, {pipeline_mode = #tpu.pipeline_mode<synchronous>, transform_indices = @transform_12, window_bounds = array<i64: 128, 1>}, {pipeline_mode = #tpu.pipeline_mode<synchronous>, transform_indices = @transform_13, window_bounds = array<i64: 2, 128>}, {pipeline_mode = #tpu.pipeline_mode<synchronous>, transform_indices = @transform_14, window_bounds = array<i64: 2, 1>}, {transform_indices = @transform_15, window_bounds = array<i64: 2, 128>}]} {
    %c0 = arith.constant 0 : index
    %c0_0 = arith.constant 0 : index
    %0 = vector.load %arg1[%c0, %c0_0] : memref<2x128xbf16, #tpu.memory_space<vmem>>, vector<2x128xbf16>
    %c0_1 = arith.constant 0 : index
    %c0_2 = arith.constant 0 : index
    %1 = vector.load %arg2[%c0_1, %c0_2] : memref<128x2xbf16, #tpu.memory_space<vmem>>, vector<128x2xbf16>
    %cst = arith.constant dense<0.000000e+00> : vector<128x128xf32>
    %2 = tpu.matmul %1, %0, %cst {dimension_numbers = #tpu.dot_dimension_numbers<[1], [0], [0], [1], [0, 0, 1, 1], [], []>} : vector<128x2xbf16>, vector<2x128xbf16>, vector<128x128xf32> -> vector<128x128xf32>
    %c0_3 = arith.constant 0 : index
    %c0_4 = arith.constant 0 : index
    %3 = vector.load %arg3[%c0_3, %c0_4] : memref<128x1xf32, #tpu.memory_space<vmem>>, vector<128x1xf32>
    %4 = vector.broadcast %3 : vector<128x1xf32> to vector<128x128xf32>
    %5 = arith.addf %2, %4 : vector<128x128xf32>
    %cst_5 = arith.constant 0.000000e+00 : f32
    %6 = vector.broadcast %cst_5 : f32 to vector<128x128xf32>
    %7 = arith.maximumf %5, %6 : vector<128x128xf32>
    %8 = arith.truncf %7 : vector<128x128xf32> to vector<128x128xbf16>
    %c0_6 = arith.constant 0 : index
    %c0_7 = arith.constant 0 : index
    %9 = vector.load %arg4[%c0_6, %c0_7] : memref<128x128xbf16, #tpu.memory_space<vmem>>, vector<128x128xbf16>
    %cst_8 = arith.constant dense<0.000000e+00> : vector<128x128xf32>
    %10 = tpu.matmul %9, %8, %cst_8 {dimension_numbers = #tpu.dot_dimension_numbers<[1], [0], [0], [1], [0, 0, 1, 1], [], []>} : vector<128x128xbf16>, vector<128x128xbf16>, vector<128x128xf32> -> vector<128x128xf32>
    %c0_9 = arith.constant 0 : index
    %c0_10 = arith.constant 0 : index
    %11 = vector.load %arg5[%c0_9, %c0_10] : memref<128x1xf32, #tpu.memory_space<vmem>>, vector<128x1xf32>
    %12 = vector.broadcast %11 : vector<128x1xf32> to vector<128x128xf32>
    %13 = arith.addf %10, %12 : vector<128x128xf32>
    %14 = arith.truncf %13 : vector<128x128xf32> to vector<128x128xbf16>
    %c0_11 = arith.constant 0 : index
    %c0_12 = arith.constant 0 : index
    %15 = vector.load %arg6[%c0_11, %c0_12] : memref<128x128xbf16, #tpu.memory_space<vmem>>, vector<128x128xbf16>
    %cst_13 = arith.constant dense<0.000000e+00> : vector<128x128xf32>
    %16 = tpu.matmul %15, %14, %cst_13 {dimension_numbers = #tpu.dot_dimension_numbers<[1], [0], [0], [1], [0, 0, 1, 1], [], []>} : vector<128x128xbf16>, vector<128x128xbf16>, vector<128x128xf32> -> vector<128x128xf32>
    %c0_14 = arith.constant 0 : index
    %c0_15 = arith.constant 0 : index
    %17 = vector.load %arg7[%c0_14, %c0_15] : memref<128x1xf32, #tpu.memory_space<vmem>>, vector<128x1xf32>
    %18 = vector.broadcast %17 : vector<128x1xf32> to vector<128x128xf32>
    %19 = arith.addf %16, %18 : vector<128x128xf32>
    %cst_16 = arith.constant 0.000000e+00 : f32
    %20 = vector.broadcast %cst_16 : f32 to vector<128x128xf32>
    %21 = arith.maximumf %19, %20 : vector<128x128xf32>
    %22 = arith.truncf %21 : vector<128x128xf32> to vector<128x128xbf16>
    %c0_17 = arith.constant 0 : index
    %c0_18 = arith.constant 0 : index
    %23 = vector.load %arg8[%c0_17, %c0_18] : memref<128x128xbf16, #tpu.memory_space<vmem>>, vector<128x128xbf16>
    %cst_19 = arith.constant dense<0.000000e+00> : vector<128x128xf32>
    %24 = tpu.matmul %23, %22, %cst_19 {dimension_numbers = #tpu.dot_dimension_numbers<[1], [0], [0], [1], [0, 0, 1, 1], [], []>} : vector<128x128xbf16>, vector<128x128xbf16>, vector<128x128xf32> -> vector<128x128xf32>
    %c0_20 = arith.constant 0 : index
    %c0_21 = arith.constant 0 : index
    %25 = vector.load %arg9[%c0_20, %c0_21] : memref<128x1xf32, #tpu.memory_space<vmem>>, vector<128x1xf32>
    %26 = vector.broadcast %25 : vector<128x1xf32> to vector<128x128xf32>
    %27 = arith.addf %24, %26 : vector<128x128xf32>
    %cst_22 = arith.constant 0.000000e+00 : f32
    %28 = vector.broadcast %cst_22 : f32 to vector<128x128xf32>
    %29 = arith.maximumf %27, %28 : vector<128x128xf32>
    %30 = arith.truncf %29 : vector<128x128xf32> to vector<128x128xbf16>
    %c0_23 = arith.constant 0 : index
    %c0_24 = arith.constant 0 : index
    %31 = vector.load %arg10[%c0_23, %c0_24] : memref<128x128xbf16, #tpu.memory_space<vmem>>, vector<128x128xbf16>
    %cst_25 = arith.constant dense<0.000000e+00> : vector<128x128xf32>
    %32 = tpu.matmul %31, %30, %cst_25 {dimension_numbers = #tpu.dot_dimension_numbers<[1], [0], [0], [1], [0, 0, 1, 1], [], []>} : vector<128x128xbf16>, vector<128x128xbf16>, vector<128x128xf32> -> vector<128x128xf32>
    %c0_26 = arith.constant 0 : index
    %c0_27 = arith.constant 0 : index
    %33 = vector.load %arg11[%c0_26, %c0_27] : memref<128x1xf32, #tpu.memory_space<vmem>>, vector<128x1xf32>
    %34 = vector.broadcast %33 : vector<128x1xf32> to vector<128x128xf32>
    %35 = arith.addf %32, %34 : vector<128x128xf32>
    %cst_28 = arith.constant 0.000000e+00 : f32
    %36 = vector.broadcast %cst_28 : f32 to vector<128x128xf32>
    %37 = arith.maximumf %35, %36 : vector<128x128xf32>
    %38 = arith.truncf %37 : vector<128x128xf32> to vector<128x128xbf16>
    %c0_29 = arith.constant 0 : index
    %c0_30 = arith.constant 0 : index
    %39 = vector.load %arg12[%c0_29, %c0_30] : memref<128x128xbf16, #tpu.memory_space<vmem>>, vector<128x128xbf16>
    %cst_31 = arith.constant dense<0.000000e+00> : vector<128x128xf32>
    %40 = tpu.matmul %39, %38, %cst_31 {dimension_numbers = #tpu.dot_dimension_numbers<[1], [0], [0], [1], [0, 0, 1, 1], [], []>} : vector<128x128xbf16>, vector<128x128xbf16>, vector<128x128xf32> -> vector<128x128xf32>
    %c0_32 = arith.constant 0 : index
    %c0_33 = arith.constant 0 : index
    %41 = vector.load %arg13[%c0_32, %c0_33] : memref<128x1xf32, #tpu.memory_space<vmem>>, vector<128x1xf32>
    %42 = vector.broadcast %41 : vector<128x1xf32> to vector<128x128xf32>
    %43 = arith.addf %40, %42 : vector<128x128xf32>
    %cst_34 = arith.constant 0.000000e+00 : f32
    %44 = vector.broadcast %cst_34 : f32 to vector<128x128xf32>
    %45 = arith.maximumf %43, %44 : vector<128x128xf32>
    %46 = arith.truncf %45 : vector<128x128xf32> to vector<128x128xbf16>
    %c0_35 = arith.constant 0 : index
    %c0_36 = arith.constant 0 : index
    %47 = vector.load %arg14[%c0_35, %c0_36] : memref<2x128xbf16, #tpu.memory_space<vmem>>, vector<2x128xbf16>
    %cst_37 = arith.constant dense<0.000000e+00> : vector<2x128xf32>
    %48 = tpu.matmul %47, %46, %cst_37 {dimension_numbers = #tpu.dot_dimension_numbers<[1], [0], [0], [1], [0, 0, 1, 1], [], []>} : vector<2x128xbf16>, vector<128x128xbf16>, vector<2x128xf32> -> vector<2x128xf32>
    %c0_38 = arith.constant 0 : index
    %c0_39 = arith.constant 0 : index
    %49 = vector.load %arg15[%c0_38, %c0_39] : memref<2x1xf32, #tpu.memory_space<vmem>>, vector<2x1xf32>
    %50 = vector.broadcast %49 : vector<2x1xf32> to vector<2x128xf32>
    %51 = arith.addf %48, %50 : vector<2x128xf32>
    %52 = tpu.iota {dimensions = array<i32: 0>} : vector<2x128xi32>
    %cst_40 = arith.constant 0.000000e+00 : f32
    %53 = vector.broadcast %cst_40 : f32 to vector<2x128xf32>
    %54 = arith.maximumf %51, %53 : vector<2x128xf32>
    %55 = vector.broadcast %cst_40 : f32 to vector<2x128xf32>
    %56 = arith.subf %51, %55 : vector<2x128xf32>
    %57 = arith.cmpf one, %56, %56 : vector<2x128xf32>
    %58 = vector.broadcast %cst_40 : f32 to vector<2x128xf32>
    %59 = arith.addf %51, %58 : vector<2x128xf32>
    %60 = math.absf %56 : vector<2x128xf32>
    %cst_41 = arith.constant 0.000000e+00 : f32
    %61 = vector.broadcast %cst_41 : f32 to vector<2x128xf32>
    %62 = arith.subf %61, %60 : vector<2x128xf32>
    %63 = math.exp %62 : vector<2x128xf32>
    %64 = math.log1p %63 : vector<2x128xf32>
    %65 = arith.addf %54, %64 : vector<2x128xf32>
    %66 = arith.select %57, %59, %65 : vector<2x128xi1>, vector<2x128xf32>
    %cst_42 = arith.constant 9.900000e-01 : f32
    %67 = vector.broadcast %cst_42 : f32 to vector<2x128xf32>
    %68 = arith.mulf %67, %66 : vector<2x128xf32>
    %cst_43 = arith.constant 0.00999999977 : f32
    %69 = vector.broadcast %cst_43 : f32 to vector<2x128xf32>
    %70 = arith.addf %69, %68 : vector<2x128xf32>
    %c1_i32 = arith.constant 1 : i32
    %71 = vector.broadcast %c1_i32 : i32 to vector<2x128xi32>
    %72 = arith.cmpi slt, %52, %71 : vector<2x128xi32>
    %73 = arith.select %72, %51, %70 : vector<2x128xi1>, vector<2x128xf32>
    %c0_44 = arith.constant 0 : index
    %c0_45 = arith.constant 0 : index
    %74 = vector.load %arg16[%c0_44, %c0_45] : memref<2x128xf32, #tpu.memory_space<vmem>>, vector<2x128xf32>
    tpu.vector_store %arg16[%c0_44, %c0_45], %73 {strides = array<i32>} : memref<2x128xf32, #tpu.memory_space<vmem>>, vector<2x128xf32>,
    return
  }
  func.func @transform_0(%arg0: i32) -> (i32, i32) {
    %c0_i32 = arith.constant 0 : i32
    %c0_i32_0 = arith.constant 0 : i32
    return %c0_i32, %arg0 : i32, i32
  }
  func.func @transform_1(%arg0: i32) -> (i32, i32) {
    %c0_i32 = arith.constant 0 : i32
    %c0_i32_0 = arith.constant 0 : i32
    %c0_i32_1 = arith.constant 0 : i32
    return %c0_i32, %c0_i32_0 : i32, i32
  }
  func.func @transform_2(%arg0: i32) -> (i32, i32) {
    %c0_i32 = arith.constant 0 : i32
    %c0_i32_0 = arith.constant 0 : i32
    %c0_i32_1 = arith.constant 0 : i32
    return %c0_i32, %c0_i32_0 : i32, i32
  }
  func.func @transform_3(%arg0: i32) -> (i32, i32) {
    %c0_i32 = arith.constant 0 : i32
    %c0_i32_0 = arith.constant 0 : i32
    %c0_i32_1 = arith.constant 0 : i32
    return %c0_i32, %c0_i32_0 : i32, i32
  }
  func.func @transform_4(%arg0: i32) -> (i32, i32) {
    %c0_i32 = arith.constant 0 : i32
    %c0_i32_0 = arith.constant 0 : i32
    %c0_i32_1 = arith.constant 0 : i32
    return %c0_i32, %c0_i32_0 : i32, i32
  }
  func.func @transform_5(%arg0: i32) -> (i32, i32) {
    %c0_i32 = arith.constant 0 : i32
    %c0_i32_0 = arith.constant 0 : i32
    %c0_i32_1 = arith.constant 0 : i32
    return %c0_i32, %c0_i32_0 : i32, i32
  }
  func.func @transform_6(%arg0: i32) -> (i32, i32) {
    %c0_i32 = arith.constant 0 : i32
    %c0_i32_0 = arith.constant 0 : i32
    %c0_i32_1 = arith.constant 0 : i32
    return %c0_i32, %c0_i32_0 : i32, i32
  }
  func.func @transform_7(%arg0: i32) -> (i32, i32) {
    %c0_i32 = arith.constant 0 : i32
    %c0_i32_0 = arith.constant 0 : i32
    %c0_i32_1 = arith.constant 0 : i32
    return %c0_i32, %c0_i32_0 : i32, i32
  }
  func.func @transform_8(%arg0: i32) -> (i32, i32) {
    %c0_i32 = arith.constant 0 : i32
    %c0_i32_0 = arith.constant 0 : i32
    %c0_i32_1 = arith.constant 0 : i32
    return %c0_i32, %c0_i32_0 : i32, i32
  }
  func.func @transform_9(%arg0: i32) -> (i32, i32) {
    %c0_i32 = arith.constant 0 : i32
    %c0_i32_0 = arith.constant 0 : i32
    %c0_i32_1 = arith.constant 0 : i32
    return %c0_i32, %c0_i32_0 : i32, i32
  }
  func.func @transform_10(%arg0: i32) -> (i32, i32) {
    %c0_i32 = arith.constant 0 : i32
    %c0_i32_0 = arith.constant 0 : i32
    %c0_i32_1 = arith.constant 0 : i32
    return %c0_i32, %c0_i32_0 : i32, i32
  }
  func.func @transform_11(%arg0: i32) -> (i32, i32) {
    %c0_i32 = arith.constant 0 : i32
    %c0_i32_0 = arith.constant 0 : i32
    %c0_i32_1 = arith.constant 0 : i32
    return %c0_i32, %c0_i32_0 : i32, i32
  }
  func.func @transform_12(%arg0: i32) -> (i32, i32) {
    %c0_i32 = arith.constant 0 : i32
    %c0_i32_0 = arith.constant 0 : i32
    %c0_i32_1 = arith.constant 0 : i32
    return %c0_i32, %c0_i32_0 : i32, i32
  }
  func.func @transform_13(%arg0: i32) -> (i32, i32) {
    %c0_i32 = arith.constant 0 : i32
    %c0_i32_0 = arith.constant 0 : i32
    %c0_i32_1 = arith.constant 0 : i32
    return %c0_i32, %c0_i32_0 : i32, i32
  }
  func.func @transform_14(%arg0: i32) -> (i32, i32) {
    %c0_i32 = arith.constant 0 : i32
    %c0_i32_0 = arith.constant 0 : i32
    %c0_i32_1 = arith.constant 0 : i32
    return %c0_i32, %c0_i32_0 : i32, i32
  }
  func.func @transform_15(%arg0: i32) -> (i32, i32) {
    %c0_i32 = arith.constant 0 : i32
    %c0_i32_0 = arith.constant 0 : i32
    return %c0_i32, %arg0 : i32, i32
  }
}

</mosaic_0001>

<bundles_post_ra>
// kernel: tpu_custom_call.1
= control target key start
LH: loop header
LB: loop body
LE: loop exit
PB: predicated region body
PF: predicated region fallthrough
CT: control target
= control target key end

     0   :  { %vm230_vm0 = vcmask 1040384   ;;  %v2265_v3 = vmov 0   ;;  %vm205_vm1 = vcmask 15360   ;;  %s2819_s0 = inlined_call_operand.vmem [shape: bf16[2,128], index: 0, kind: input, shape index: {}]   ;;  %s2820_s1 = inlined_call_operand.vmem [shape: bf16[128,2], index: 1, kind: input, shape index: {}]   ;;  %s2821_s2 = inlined_call_operand.vmem [shape: f32[128,1], index: 2, kind: input, shape index: {}]   ;;  %s2822_s3 = inlined_call_operand.vmem [shape: bf16[128,128], index: 3, kind: input, shape index: {}]   ;;  %s2823_s4 = inlined_call_operand.vmem [shape: f32[128,1], index: 4, kind: input, shape index: {}]   ;;  %s2824_s5 = inlined_call_operand.vmem [shape: bf16[128,128], index: 5, kind: input, shape index: {}]   ;;  %s2825_s6 = inlined_call_operand.vmem [shape: f32[128,1], index: 6, kind: input, shape index: {}]   ;;  %s2826_s7 = inlined_call_operand.vmem [shape: bf16[128,128], index: 7, kind: input, shape index: {}]   ;;  %s2827_s8 = inlined_call_operand.vmem [shape: f32[128,1], index: 8, kind: input, shape index: {}]   ;;  %s2828_s9 = inlined_call_operand.vmem [shape: bf16[128,128], index: 9, kind: input, shape index: {}]   ;;  %s2829_s10 = inlined_call_operand.vmem [shape: f32[128,1], index: 10, kind: input, shape index: {}]   ;;  %s2830_s11 = inlined_call_operand.vmem [shape: bf16[128,128], index: 11, kind: input, shape index: {}]   ;;  %s2831_s12 = inlined_call_operand.vmem [shape: f32[128,1], index: 12, kind: input, shape index: {}]   ;;  %s2832_s13 = inlined_call_operand.vmem [shape: bf16[2,128], index: 13, kind: input, shape index: {}]   ;;  %s2833_s14 = inlined_call_operand.vmem [shape: f32[2,1], index: 14, kind: input, shape index: {}]   ;;  %s2834_s15 = inlined_call_operand.hbm [shape: f32[2,128], index: 15, kind: output, shape index: {}]  }
   0x1   :  { %v52_v0 = vld [vmem:[%s2819_s0] sm:$0x1]  ;;  %v71_v1 = vld [vmem:[%s2821_s2 + $0x10] sm:$0xff]  ;;  %2188 = vset.pattern.permute.xlu1 %v2265_v3  ;;  %2187 = vset.pattern.permute.xlu0 %v2265_v3  ;;  %v2190_v6 = vld [vmem:[%s2820_s1 + $0x8] sm:$0xff]  }
   0x2   :  { %v69_v2 = vld [vmem:[%s2821_s2] sm:$0xff]  ;;  %v232_v4 = vsel %vm230_vm0, %v52_v0, 0  ;;  %2182 = vmatprep.subr.msk.bf16.mxu0 %vm230_vm0, %v52_v0  ;;  %97 = vperm.xlu1 %2188, %v71_v1   ;;  %v72_v7 = vld [vmem:[%s2821_s2 + $0x18] sm:$0xff]  ;;  %v70_v8 = vld [vmem:[%s2821_s2 + $0x8] sm:$0xff] }
   0x3   :  { %v2189_v5 = vld [vmem:[%s2820_s1] sm:$0xff]   ;;  %87 = vperm.xlu0 %2187, %v69_v2   ;;  %1985 = vmatpush3.bf16.msra.mxu0 %v232_v4  ;;  %v2191_v9 = vld [vmem:[%s2820_s1 + $0x10] sm:$0xff]   ;;  %v74_v10 = vld [vmem:[%s2821_s2 + $0x28] sm:$0xff] }
   0x4   :  { %1986 = vmatprep.mubr.msk.bf16.mxu0 %vm205_vm1, %v2189_v5  ;;  %v73_v11 = vld [vmem:[%s2821_s2 + $0x20] sm:$0xff]  ;;  %v2192_v12 = vld [vmem:[%s2820_s1 + $0x18] sm:$0xff]   ;;  %v75_v15 = vld [vmem:[%s2821_s2 + $0x30] sm:$0xff] }
   0x5   :  { %v76_v13 = vld [vmem:[%s2821_s2 + $0x38] sm:$0xff]  ;;  %v2193_v14 = vld [vmem:[%s2820_s1 + $0x20] sm:$0xff]   ;;  %v78_v16 = vld [vmem:[%s2821_s2 + $0x48] sm:$0xff] }
   0x6   :  { %1987 = vmatmul.mubr.msk.bf16.vlgmr.msra.gmra.mrb[0].mxu0 %vm205_vm1, %v2190_v6  ;;  %102 = vperm.xlu1 %2188, %v72_v7   ;;  %v77_v17 = vld [vmem:[%s2821_s2 + $0x40] sm:$0xff]  ;;  %v2194_v18 = vld [vmem:[%s2820_s1 + $0x28] sm:$0xff]   ;;  %v80_v19 = vld [vmem:[%s2821_s2 + $0x58] sm:$0xff] }
   0x7   :  { %92 = vperm.xlu0 %2187, %v70_v8   ;;  %1990 = vmatprep.mubr.msk.bf16.mxu0 %vm205_vm1, %v2191_v9  ;;  %v2195_v20 = vld [vmem:[%s2820_s1 + $0x30] sm:$0xff]   ;;  %v82_v22 = vld [vmem:[%s2821_s2 + $0x68] sm:$0xff]  ;;  %v81_v23 = vld [vmem:[%s2821_s2 + $0x60] sm:$0xff] }
   0x8   :  { %v79_v21 = vld [vmem:[%s2821_s2 + $0x50] sm:$0xff]  ;;  %v2196_v24 = vld [vmem:[%s2820_s1 + $0x38] sm:$0xff]   ;;  %v372_v27 = vld [vmem:[%s2823_s4 + $0x8] sm:$0xff] }
   0x9   :  { %v84_v25 = vld [vmem:[%s2821_s2 + $0x78] sm:$0xff]  ;;  %v83_v26 = vld [vmem:[%s2821_s2 + $0x70] sm:$0xff]  ;;  %v371_v28 = vld [vmem:[%s2823_s4] sm:$0xff] }
   0xa   :  { %112 = vperm.xlu1 %2188, %v74_v10   ;;  %v374_v29 = vld [vmem:[%s2823_s4 + $0x18] sm:$0xff]  ;;  %v373_v30 = vld [vmem:[%s2823_s4 + $0x10] sm:$0xff]  ;;  %v376_v31 = vld [vmem:[%s2823_s4 + $0x28] sm:$0xff] }
   0xb   :  { %107 = vperm.xlu0 %2187, %v73_v11   ;;  %v375_v32 = vld [vmem:[%s2823_s4 + $0x20] sm:$0xff]  ;;  %v378_v33 = vld [vmem:[%s2823_s4 + $0x38] sm:$0xff]  ;;  %v377_v34 = vld [vmem:[%s2823_s4 + $0x30] sm:$0xff] }
   0xc   :  { %v380_v35 = vld [vmem:[%s2823_s4 + $0x48] sm:$0xff]  ;;  %v379_v36 = vld [vmem:[%s2823_s4 + $0x40] sm:$0xff]  ;;  %v382_v37 = vld [vmem:[%s2823_s4 + $0x58] sm:$0xff] }
   0xd   :  { %v381_v38 = vld [vmem:[%s2823_s4 + $0x50] sm:$0xff]  ;;  %v384_v39 = vld [vmem:[%s2823_s4 + $0x68] sm:$0xff]  ;;  %v383_v40 = vld [vmem:[%s2823_s4 + $0x60] sm:$0xff] }
   0xe   :  { %1991 = vmatmul.mubr.msk.bf16.gmra.mrb[4].mxu0 %vm205_vm1, %v2192_v12  ;;  %122 = vperm.xlu1 %2188, %v76_v13   ;;  %v386_v41 = vld [vmem:[%s2823_s4 + $0x78] sm:$0xff]  ;;  %v385_v42 = vld [vmem:[%s2823_s4 + $0x70] sm:$0xff]  ;;  %v637_v43 = vld [vmem:[%s2825_s6 + $0x8] sm:$0xff] }
   0xf   :  { %117 = vperm.xlu0 %2187, %v75_v15   ;;  %1994 = vmatprep.mubr.msk.bf16.mxu0 %vm205_vm1, %v2193_v14  ;;  %v636_v44 = vld [vmem:[%s2825_s6] sm:$0xff]  ;;  %v639_v45 = vld [vmem:[%s2825_s6 + $0x18] sm:$0xff] }
  0x12   :  { %132 = vperm.xlu1 %2188, %v78_v16  }
  0x13   :  { %127 = vperm.xlu0 %2187, %v77_v17  }
  0x16   :  { %1995 = vmatmul.mubr.msk.bf16.gmra.mrb[8].mxu0 %vm205_vm1, %v2194_v18  ;;  %142 = vperm.xlu1 %2188, %v80_v19  }
  0x17   :  { %137 = vperm.xlu0 %2187, %v79_v21   ;;  %1998 = vmatprep.mubr.msk.bf16.mxu0 %vm205_vm1, %v2195_v20 }
  0x1a   :  { %152 = vperm.xlu1 %2188, %v82_v22  }
  0x1b   :  { %147 = vperm.xlu0 %2187, %v81_v23  }
  0x1e   :  { %1999 = vmatmul.mubr.msk.bf16.gmra.mrb[12].mxu0 %vm205_vm1, %v2196_v24  ;;  %162 = vperm.xlu1 %2188, %v84_v25  }
  0x1f   :  { %157 = vperm.xlu0 %2187, %v83_v26  }
  0x22   :  { %394 = vperm.xlu1 %2188, %v372_v27  }
  0x23   :  { %389 = vperm.xlu0 %2187, %v371_v28  }
  0x26   :  { %404 = vperm.xlu1 %2188, %v374_v29  }
  0x27   :  { %399 = vperm.xlu0 %2187, %v373_v30  }
  0x2a   :  { %414 = vperm.xlu1 %2188, %v376_v31  }
  0x2b   :  { %409 = vperm.xlu0 %2187, %v375_v32  }
  0x2e   :  { %424 = vperm.xlu1 %2188, %v378_v33  }
  0x2f   :  { %419 = vperm.xlu0 %2187, %v377_v34  }
  0x32   :  { %434 = vperm.xlu1 %2188, %v380_v35  }
  0x33   :  { %429 = vperm.xlu0 %2187, %v379_v36  }
  0x36   :  { %444 = vperm.xlu1 %2188, %v382_v37  }
  0x37   :  { %439 = vperm.xlu0 %2187, %v381_v38  }
  0x3a   :  { %454 = vperm.xlu1 %2188, %v384_v39  }
  0x3b   :  { %449 = vperm.xlu0 %2187, %v383_v40  }
  0x3e   :  { %464 = vperm.xlu1 %2188, %v386_v41  }
  0x3f   :  { %459 = vperm.xlu0 %2187, %v385_v42  }
  0x42   :  { %659 = vperm.xlu1 %2188, %v637_v43  }
  0x43   :  { %654 = vperm.xlu0 %2187, %v636_v44  }
  0x44   :  { %20 = vsyncpa [#allocation3], 0  ;;  %v638_v46 = vld [vmem:[%s2825_s6 + $0x10] sm:$0xff]  ;;  %v641_v47 = vld [vmem:[%s2825_s6 + $0x28] sm:$0xff]  ;;  %vm2267_vm2 = vmmov 0  }
  0x45   :  { %v640_v48 = vld [vmem:[%s2825_s6 + $0x20] sm:$0xff]  ;;  %v643_v49 = vld [vmem:[%s2825_s6 + $0x38] sm:$0xff]  ;;  %v642_v50 = vld [vmem:[%s2825_s6 + $0x30] sm:$0xff] }
  0x46   :  { %669 = vperm.xlu1 %2188, %v639_v45   ;;  %v645_v51 = vld [vmem:[%s2825_s6 + $0x48] sm:$0xff]  ;;  %v644_v52 = vld [vmem:[%s2825_s6 + $0x40] sm:$0xff]  ;;  %v647_v53 = vld [vmem:[%s2825_s6 + $0x58] sm:$0xff] }
  0x47   :  { %664 = vperm.xlu0 %2187, %v638_v46   ;;  %v646_v54 = vld [vmem:[%s2825_s6 + $0x50] sm:$0xff]  ;;  %v649_v55 = vld [vmem:[%s2825_s6 + $0x68] sm:$0xff]  ;;  %v648_v56 = vld [vmem:[%s2825_s6 + $0x60] sm:$0xff] }
  0x48   :  { %v651_v57 = vld [vmem:[%s2825_s6 + $0x78] sm:$0xff]  ;;  %v650_v58 = vld [vmem:[%s2825_s6 + $0x70] sm:$0xff]  ;;  %v918_v59 = vld [vmem:[%s2827_s8 + $0x8] sm:$0xff] }
  0x49   :  { %v917_v60 = vld [vmem:[%s2827_s8] sm:$0xff]  ;;  %v920_v61 = vld [vmem:[%s2827_s8 + $0x18] sm:$0xff]  ;;  %v919_v62 = vld [vmem:[%s2827_s8 + $0x10] sm:$0xff] }
  0x4a   :  { %679 = vperm.xlu1 %2188, %v641_v47   ;;  %v922_v63 = vld [vmem:[%s2827_s8 + $0x28] sm:$0xff]  ;;  %v921_v0 = vld [vmem:[%s2827_s8 + $0x20] sm:$0xff]  ;;  %v924_v1 = vld [vmem:[%s2827_s8 + $0x38] sm:$0xff] }
  0x4b   :  { %674 = vperm.xlu0 %2187, %v640_v48   ;;  %v923_v2 = vld [vmem:[%s2827_s8 + $0x30] sm:$0xff]  ;;  %v926_v3 = vld [vmem:[%s2827_s8 + $0x48] sm:$0xff]  ;;  %v925_v4 = vld [vmem:[%s2827_s8 + $0x40] sm:$0xff] }
  0x4c   :  { %v928_v5 = vld [vmem:[%s2827_s8 + $0x58] sm:$0xff]  ;;  %v927_v6 = vld [vmem:[%s2827_s8 + $0x50] sm:$0xff]  ;;  %v930_v7 = vld [vmem:[%s2827_s8 + $0x68] sm:$0xff] }
  0x4d   :  { %v929_v8 = vld [vmem:[%s2827_s8 + $0x60] sm:$0xff]  ;;  %v932_v9 = vld [vmem:[%s2827_s8 + $0x78] sm:$0xff]  ;;  %v931_v10 = vld [vmem:[%s2827_s8 + $0x70] sm:$0xff] }
  0x4e   :  { %689 = vperm.xlu1 %2188, %v643_v49   ;;  %v1199_v11 = vld [vmem:[%s2829_s10 + $0x8] sm:$0xff]  ;;  %v1198_v12 = vld [vmem:[%s2829_s10] sm:$0xff]  ;;  %v1201_v14 = vld [vmem:[%s2829_s10 + $0x18] sm:$0xff] }
  0x4f   :  { %684 = vperm.xlu0 %2187, %v642_v50   ;;  %v2197_v13 = vld [vmem:[%s2822_s3] sm:$0xff]   ;;  %v1200_v15 = vld [vmem:[%s2829_s10 + $0x10] sm:$0xff]  ;;  %v1203_v16 = vld [vmem:[%s2829_s10 + $0x28] sm:$0xff] }
  0x50   :  { %2018 = vmatprep.mubr.bf16.mxu1 %v2197_v13  ;;  %v1202_v17 = vld [vmem:[%s2829_s10 + $0x20] sm:$0xff]  ;;  %v1205_v18 = vld [vmem:[%s2829_s10 + $0x38] sm:$0xff]  ;;  %v1204_v19 = vld [vmem:[%s2829_s10 + $0x30] sm:$0xff] }
  0x51   :  { %v1207_v20 = vld [vmem:[%s2829_s10 + $0x48] sm:$0xff]  ;;  %v1206_v21 = vld [vmem:[%s2829_s10 + $0x40] sm:$0xff]  ;;  %v1209_v22 = vld [vmem:[%s2829_s10 + $0x58] sm:$0xff] }
  0x52   :  { %699 = vperm.xlu1 %2188, %v645_v51   ;;  %v1208_v23 = vld [vmem:[%s2829_s10 + $0x50] sm:$0xff]  ;;  %v1211_v24 = vld [vmem:[%s2829_s10 + $0x68] sm:$0xff]  ;;  %v1210_v25 = vld [vmem:[%s2829_s10 + $0x60] sm:$0xff] }
  0x53   :  { %694 = vperm.xlu0 %2187, %v644_v52   ;;  %v1213_v26 = vld [vmem:[%s2829_s10 + $0x78] sm:$0xff]  ;;  %v1212_v27 = vld [vmem:[%s2829_s10 + $0x70] sm:$0xff]  ;;  %v1480_v28 = vld [vmem:[%s2831_s12 + $0x8] sm:$0xff] }
  0x54   :  { %v1479_v29 = vld [vmem:[%s2831_s12] sm:$0xff]  ;;  %v1482_v30 = vld [vmem:[%s2831_s12 + $0x18] sm:$0xff]  ;;  %v1481_v31 = vld [vmem:[%s2831_s12 + $0x10] sm:$0xff] }
  0x55   :  { %v1484_v32 = vld [vmem:[%s2831_s12 + $0x28] sm:$0xff]  ;;  %v1483_v33 = vld [vmem:[%s2831_s12 + $0x20] sm:$0xff]  ;;  %v1486_v34 = vld [vmem:[%s2831_s12 + $0x38] sm:$0xff] }
  0x56   :  { %709 = vperm.xlu1 %2188, %v647_v53   ;;  %v1485_v35 = vld [vmem:[%s2831_s12 + $0x30] sm:$0xff]  ;;  %v1488_v36 = vld [vmem:[%s2831_s12 + $0x48] sm:$0xff]  ;;  %v1487_v37 = vld [vmem:[%s2831_s12 + $0x40] sm:$0xff] }
  0x57   :  { %704 = vperm.xlu0 %2187, %v646_v54   ;;  %v1490_v38 = vld [vmem:[%s2831_s12 + $0x58] sm:$0xff]  ;;  %v1489_v39 = vld [vmem:[%s2831_s12 + $0x50] sm:$0xff]  ;;  %v1492_v40 = vld [vmem:[%s2831_s12 + $0x68] sm:$0xff] }
  0x58   :  { %v1491_v41 = vld [vmem:[%s2831_s12 + $0x60] sm:$0xff]  ;;  %v1494_v42 = vld [vmem:[%s2831_s12 + $0x78] sm:$0xff]  ;;  %v1493_v43 = vld [vmem:[%s2831_s12 + $0x70] sm:$0xff] }
  0x59   :  { %v1745_v44 = vld [vmem:[%s2833_s14] sm:$0x3] }
  0x5a   :  { %719 = vperm.xlu1 %2188, %v649_v55  }
  0x5b   :  { %714 = vperm.xlu0 %2187, %v648_v56  }
  0x5e   :  { %729 = vperm.xlu1 %2188, %v651_v57  }
  0x5f   :  { %724 = vperm.xlu0 %2187, %v650_v58  }
  0x62   :  { %940 = vperm.xlu1 %2188, %v918_v59  }
  0x63   :  { %935 = vperm.xlu0 %2187, %v917_v60  }
  0x66   :  { %950 = vperm.xlu1 %2188, %v920_v61  }
  0x67   :  { %945 = vperm.xlu0 %2187, %v919_v62  }
  0x6a   :  { %960 = vperm.xlu1 %2188, %v922_v63  }
  0x6b   :  { %955 = vperm.xlu0 %2187, %v921_v0  }
  0x6e   :  { %970 = vperm.xlu1 %2188, %v924_v1  }
  0x6f   :  { %965 = vperm.xlu0 %2187, %v923_v2  }
  0x72   :  { %980 = vperm.xlu1 %2188, %v926_v3  }
  0x73   :  { %975 = vperm.xlu0 %2187, %v925_v4  }
  0x76   :  { %990 = vperm.xlu1 %2188, %v928_v5  }
  0x77   :  { %985 = vperm.xlu0 %2187, %v927_v6  }
  0x7a   :  { %1000 = vperm.xlu1 %2188, %v930_v7  }
  0x7b   :  { %995 = vperm.xlu0 %2187, %v929_v8  }
  0x7e   :  { %1010 = vperm.xlu1 %2188, %v932_v9  }
  0x7f   :  { %1005 = vperm.xlu0 %2187, %v931_v10  }
  0x81   :  { %v98_v46 = vpop.permute.xlu1 %97 }
  0x82   :  { %1221 = vperm.xlu1 %2188, %v1199_v11   ;;  %v88_v45 = vpop.permute.xlu0 %87 }
  0x83   :  { %1216 = vperm.xlu0 %2187, %v1198_v12  }
  0x85   :  { %v103_v48 = vpop.permute.xlu1 %102 }
  0x86   :  { %1231 = vperm.xlu1 %2188, %v1201_v14   ;;  %v93_v47 = vpop.permute.xlu0 %92 }
  0x87   :  { %1226 = vperm.xlu0 %2187, %v1200_v15  }
  0x89   :  { %v113_v50 = vpop.permute.xlu1 %112 }
  0x8a   :  { %1241 = vperm.xlu1 %2188, %v1203_v16   ;;  %v108_v49 = vpop.permute.xlu0 %107 }
  0x8b   :  { %1236 = vperm.xlu0 %2187, %v1202_v17  }
  0x8d   :  { %v123_v55 = vpop.permute.xlu1 %122 }
  0x8e   :  { %1251 = vperm.xlu1 %2188, %v1205_v18   ;;  %v118_v51 = vpop.permute.xlu0 %117 }
  0x8f   :  { %1246 = vperm.xlu0 %2187, %v1204_v19  }
  0x91   :  { %v133_v3 = vpop.permute.xlu1 %132 }
  0x92   :  { %1261 = vperm.xlu1 %2188, %v1207_v20   ;;  %v128_v63 = vpop.permute.xlu0 %127 }
  0x93   :  { %1256 = vperm.xlu0 %2187, %v1206_v21  }
  0x95   :  { %v143_v16 = vpop.permute.xlu1 %142 }
  0x96   :  { %1271 = vperm.xlu1 %2188, %v1209_v22   ;;  %v138_v12 = vpop.permute.xlu0 %137 }
  0x97   :  { %1266 = vperm.xlu0 %2187, %v1208_v23  }
  0x9a   :  { %1281 = vperm.xlu1 %2188, %v1211_v24   ;;  %v148_v24 = vpop.permute.xlu0 %147 }
  0x9b   :  { %1276 = vperm.xlu0 %2187, %v1210_v25  }
  0x9e   :  { %1291 = vperm.xlu1 %2188, %v1213_v26  }
  0x9f   :  { %1286 = vperm.xlu0 %2187, %v1212_v27  }
  0xa2   :  { %1502 = vperm.xlu1 %2188, %v1480_v28  }
  0xa3   :  { %1497 = vperm.xlu0 %2187, %v1479_v29   ;;  %v153_v29 = vpop.permute.xlu1 %152 }
  0xa6   :  { %1512 = vperm.xlu1 %2188, %v1482_v30  }
  0xa7   :  { %1507 = vperm.xlu0 %2187, %v1481_v31  }
  0xaa   :  { %1522 = vperm.xlu1 %2188, %v1484_v32  }
  0xab   :  { %1517 = vperm.xlu0 %2187, %v1483_v33  }
  0xae   :  { %1532 = vperm.xlu1 %2188, %v1486_v34  }
  0xaf   :  { %1527 = vperm.xlu0 %2187, %v1485_v35  }
  0xb2   :  { %1542 = vperm.xlu1 %2188, %v1488_v36   ;;  %v158_v36 = vpop.permute.xlu0 %157 }
  0xb3   :  { %1537 = vperm.xlu0 %2187, %v1487_v37  }
  0xb6   :  { %1552 = vperm.xlu1 %2188, %v1490_v38  }
  0xb7   :  { %1547 = vperm.xlu0 %2187, %v1489_v39  }
  0xba   :  { %1562 = vperm.xlu1 %2188, %v1492_v40  }
  0xbb   :  { %1557 = vperm.xlu0 %2187, %v1491_v41   ;;  %v163_v41 = vpop.permute.xlu1 %162 }
  0xbe   :  { %1572 = vperm.xlu1 %2188, %v1494_v42  }
  0xbf   :  { %1567 = vperm.xlu0 %2187, %v1493_v43  }
  0xc3   :  { %1748 = vperm.xlu0 %2187, %v1745_v44  }
  0xd9   :  { %v1988_v52 = vpop.f32.mrb[0].mxu0 }
  0xda   :  { %v277_v53 = vadd.f32 %v1988_v52, %v98_v46  ;;  %v268_v54 = vpop.f32.mrb[1].mxu0 }
  0xdb   :  { %v269_v56 = vadd.f32 %v268_v54, %v88_v45  ;;  %v1989_v57 = vpop.f32.mrb[2].mxu0  ;;  %v2199_v54 = vld [vmem:[%s2822_s3 + $0x10] sm:$0xff]  }
  0xdc   :  { %v280_v58 = vadd.f32 %v1989_v57, %v103_v48  ;;  %v271_v59 = vpop.f32.mrb[3].mxu0  ;;  %v333_v61 = vmax.f32 %v277_v53, 0.0  ;;  %v2198_v53 = vld [vmem:[%s2822_s3 + $0x8] sm:$0xff]  }
  0xdd   :  { %v272_v60 = vadd.f32 %v271_v59, %v93_v47  ;;  %v331_v0 = vmax.f32 %v269_v56, 0.0  ;;  %v2201_v56 = vld [vmem:[%s2822_s3 + $0x20] sm:$0xff]   ;;  %v2202_v57 = vld [vmem:[%s2822_s3 + $0x28] sm:$0xff]   ;;  %v2204_v59 = vld [vmem:[%s2822_s3 + $0x38] sm:$0xff]  }
  0xde   :  { %v334_v62 = vmax.f32 %v280_v58, 0.0  ;;  %v2203_v58 = vld [vmem:[%s2822_s3 + $0x30] sm:$0xff]  }
  0xdf   :  { %v332_v1 = vmax.f32 %v272_v60, 0.0  ;;  %v2205_v60 = vld [vmem:[%s2824_s5] sm:$0xff]  }
  0xe0   :  { %v348_v2 = vpack.c.bf16 %v334_v62, %v333_v61  ;;  %2050 = vmatprep.mubr.bf16.mxu0 %v2205_v60  ;;  %v395_v61 = vpop.permute.xlu1 %394  ;;  %v390_v62 = vpop.permute.xlu0 %389  ;;  %v2213_v60 = vld [vmem:[%s2826_s7] sm:$0xff]  }
  0xe1   :  { %v1992_v4 = vpop.f32.mrb[4].mxu0  ;;  %v347_v5 = vpack.c.bf16 %v332_v1, %v331_v0 }
  0xe2   :  { %v293_v6 = vadd.f32 %v1992_v4, %v118_v51  ;;  %v284_v7 = vpop.f32.mrb[5].mxu0 }
  0xe3   :  { %v285_v8 = vadd.f32 %v284_v7, %v108_v49  ;;  %v1993_v9 = vpop.f32.mrb[6].mxu0  ;;  %2002 = vmatprep.subr.bf16.mxu1 %v347_v5 }
  0xe4   :  { %v296_v10 = vadd.f32 %v1993_v9, %v123_v55  ;;  %v287_v11 = vpop.f32.mrb[7].mxu0  ;;  %2003 = vmatpush3.bf16.msra.mxu1 %v347_v5  ;;  %v337_v14 = vmax.f32 %v293_v6, 0.0  ;;  %v2200_v55 = vld [vmem:[%s2822_s3 + $0x18] sm:$0xff]   ;;  %v400_v0 = vpop.permute.xlu0 %399 }
  0xe5   :  { %v288_v13 = vadd.f32 %v287_v11, %v113_v50  ;;  %2004 = vmatprep.subr.bf16.mxu1 %v348_v2  ;;  %v335_v17 = vmax.f32 %v285_v8, 0.0 }
  0xe6   :  { %v338_v15 = vmax.f32 %v296_v10, 0.0 }
  0xe7   :  { %v336_v18 = vmax.f32 %v288_v13, 0.0 }
  0xe8   :  { %v350_v19 = vpack.c.bf16 %v338_v15, %v337_v14  ;;  %2005 = vmatpush3.bf16.msra.mxu1 %v348_v2  ;;  %v410_v2 = vpop.permute.xlu0 %409 }
  0xe9   :  { %v349_v20 = vpack.c.bf16 %v336_v18, %v335_v17  ;;  %v1996_v21 = vpop.f32.mrb[8].mxu0 }
  0xea   :  { %v309_v22 = vadd.f32 %v1996_v21, %v138_v12  ;;  %v300_v23 = vpop.f32.mrb[9].mxu0 }
  0xeb   :  { %v301_v25 = vadd.f32 %v300_v23, %v128_v63  ;;  %v1997_v26 = vpop.f32.mrb[10].mxu0  ;;  %2006 = vmatprep.subr.bf16.mxu1 %v349_v20  ;;  %v405_v63 = vpop.permute.xlu1 %404 }
  0xec   :  { %v312_v27 = vadd.f32 %v1997_v26, %v143_v16  ;;  %v303_v28 = vpop.f32.mrb[11].mxu0  ;;  %2007 = vmatpush3.bf16.msra.mxu1 %v349_v20  ;;  %v341_v31 = vmax.f32 %v309_v22, 0.0  ;;  %v420_v6 = vpop.permute.xlu0 %419 }
  0xed   :  { %v304_v30 = vadd.f32 %v303_v28, %v133_v3  ;;  %2008 = vmatprep.subr.bf16.mxu1 %v350_v19  ;;  %v339_v33 = vmax.f32 %v301_v25, 0.0 }
  0xee   :  { %v342_v32 = vmax.f32 %v312_v27, 0.0 }
  0xef   :  { %v340_v34 = vmax.f32 %v304_v30, 0.0  ;;  %v415_v1 = vpop.permute.xlu1 %414 }
  0xf0   :  { %v352_v35 = vpack.c.bf16 %v342_v32, %v341_v31  ;;  %2009 = vmatpush3.bf16.msra.mxu1 %v350_v19  ;;  %v430_v16 = vpop.permute.xlu0 %429 }
  0xf1   :  { %v351_v37 = vpack.c.bf16 %v340_v34, %v339_v33  ;;  %v2000_v38 = vpop.f32.mrb[12].mxu0 }
  0xf2   :  { %v325_v39 = vadd.f32 %v2000_v38, %v158_v36  ;;  %v316_v40 = vpop.f32.mrb[13].mxu0 }
  0xf3   :  { %v317_v42 = vadd.f32 %v316_v40, %v148_v24  ;;  %v2001_v43 = vpop.f32.mrb[14].mxu0  ;;  %2010 = vmatprep.subr.bf16.mxu1 %v351_v37  ;;  %v425_v4 = vpop.permute.xlu1 %424 }
  0xf4   :  { %v328_v44 = vadd.f32 %v2001_v43, %v163_v41  ;;  %v319_v45 = vpop.f32.mrb[15].mxu0  ;;  %2011 = vmatpush3.bf16.msra.mxu1 %v351_v37  ;;  %v345_v47 = vmax.f32 %v325_v39, 0.0  ;;  %v440_v27 = vpop.permute.xlu0 %439 }
  0xf5   :  { %v320_v46 = vadd.f32 %v319_v45, %v153_v29  ;;  %2012 = vmatprep.subr.bf16.mxu1 %v352_v35  ;;  %v343_v49 = vmax.f32 %v317_v42, 0.0 }
  0xf6   :  { %v346_v48 = vmax.f32 %v328_v44, 0.0 }
  0xf7   :  { %v344_v50 = vmax.f32 %v320_v46, 0.0  ;;  %v435_v15 = vpop.permute.xlu1 %434 }
  0xf8   :  { %v354_v51 = vpack.c.bf16 %v346_v48, %v345_v47  ;;  %2013 = vmatpush3.bf16.msra.mxu1 %v352_v35  ;;  %v450_v36 = vpop.permute.xlu0 %449 }
  0xf9   :  { %v353_v52 = vpack.c.bf16 %v344_v50, %v343_v49 }
  0xfb   :  { %2014 = vmatprep.subr.bf16.mxu1 %v353_v52  ;;  %v445_v25 = vpop.permute.xlu1 %444 }
  0xfc   :  { %2015 = vmatpush3.bf16.msra.mxu1 %v353_v52  ;;  %v460_v44 = vpop.permute.xlu0 %459 }
  0xfd   :  { %2016 = vmatprep.subr.bf16.mxu1 %v354_v51 }
  0xff   :  { %v455_v32 = vpop.permute.xlu1 %454 }
 0x100   :  { %2017 = vmatpush3.bf16.msra.mxu1 %v354_v51 }
 0x103   :  { %2019 = vmatmul.mubr.bf16.vlgmr.msra.gmra.mrb[0].mxu1 %v2198_v53  ;;  %v465_v42 = vpop.permute.xlu1 %464  ;;  %v2206_v53 = vld [vmem:[%s2824_s5 + $0x8] sm:$0xff]  }
 0x104   :  { %2022 = vmatprep.mubr.bf16.mxu1 %v2199_v54  ;;  %v2207_v54 = vld [vmem:[%s2824_s5 + $0x10] sm:$0xff]  }
 0x10b   :  { %2023 = vmatmul.mubr.bf16.gmra.mrb[4].mxu1 %v2200_v55  ;;  %v2208_v55 = vld [vmem:[%s2824_s5 + $0x18] sm:$0xff]  }
 0x10c   :  { %2026 = vmatprep.mubr.bf16.mxu1 %v2201_v56  ;;  %v2209_v56 = vld [vmem:[%s2824_s5 + $0x20] sm:$0xff]  }
 0x113   :  { %2027 = vmatmul.mubr.bf16.gmra.mrb[8].mxu1 %v2202_v57  ;;  %v2210_v57 = vld [vmem:[%s2824_s5 + $0x28] sm:$0xff]  }
 0x114   :  { %2030 = vmatprep.mubr.bf16.mxu1 %v2203_v58  ;;  %v2211_v58 = vld [vmem:[%s2824_s5 + $0x30] sm:$0xff]  }
 0x11b   :  { %2031 = vmatmul.mubr.bf16.gmra.mrb[12].mxu1 %v2204_v59  ;;  %v2212_v59 = vld [vmem:[%s2824_s5 + $0x38] sm:$0xff]  }
 0x11c   :  { %2082 = vmatprep.mubr.bf16.mxu1 %v2213_v60 }
 0x1d6   :  { %v2020_v3 = vpop.f32.mrb[0].mxu1 }
 0x1d7   :  { %v549_v5 = vpop.f32.mrb[1].mxu1  ;;  %v558_v8 = vadd.f32 %v2020_v3, %v400_v0 }
 0x1d8   :  { %v2021_v7 = vpop.f32.mrb[2].mxu1  ;;  %v550_v11 = vadd.f32 %v549_v5, %v390_v62  ;;  %v660_v62 = vpop.permute.xlu1 %659 }
 0x1d9   :  { %v561_v9 = vadd.f32 %v2021_v7, %v405_v63  ;;  %v552_v10 = vpop.f32.mrb[3].mxu1 }
 0x1da   :  { %v553_v12 = vadd.f32 %v552_v10, %v395_v61  ;;  %v655_v61 = vpop.permute.xlu0 %654 }
 0x1db   :  { %v613_v13 = vpack.c.bf16 %v561_v9, %v558_v8 }
 0x1dc   :  { %v612_v14 = vpack.c.bf16 %v553_v12, %v550_v11  ;;  %v670_v0 = vpop.permute.xlu1 %669 }
 0x1de   :  { %v2024_v17 = vpop.f32.mrb[4].mxu1  ;;  %2034 = vmatprep.subr.bf16.mxu0 %v612_v14  ;;  %v665_v63 = vpop.permute.xlu0 %664 }
 0x1df   :  { %v565_v18 = vpop.f32.mrb[5].mxu1  ;;  %2035 = vmatpush3.bf16.msra.mxu0 %v612_v14  ;;  %v574_v20 = vadd.f32 %v2024_v17, %v420_v6 }
 0x1e0   :  { %v2025_v19 = vpop.f32.mrb[6].mxu1  ;;  %2036 = vmatprep.subr.bf16.mxu0 %v613_v13  ;;  %v566_v23 = vadd.f32 %v565_v18, %v410_v2  ;;  %v680_v2 = vpop.permute.xlu1 %679 }
 0x1e1   :  { %v577_v21 = vadd.f32 %v2025_v19, %v425_v4  ;;  %v568_v22 = vpop.f32.mrb[7].mxu1 }
 0x1e2   :  { %v569_v24 = vadd.f32 %v568_v22, %v415_v1  ;;  %v675_v1 = vpop.permute.xlu0 %674 }
 0x1e3   :  { %v615_v26 = vpack.c.bf16 %v577_v21, %v574_v20  ;;  %2037 = vmatpush3.bf16.msra.mxu0 %v613_v13 }
 0x1e4   :  { %v614_v28 = vpack.c.bf16 %v569_v24, %v566_v23  ;;  %v690_v7 = vpop.permute.xlu1 %689 }
 0x1e6   :  { %v2028_v29 = vpop.f32.mrb[8].mxu1  ;;  %2038 = vmatprep.subr.bf16.mxu0 %v614_v28  ;;  %v685_v3 = vpop.permute.xlu0 %684 }
 0x1e7   :  { %v581_v30 = vpop.f32.mrb[9].mxu1  ;;  %2039 = vmatpush3.bf16.msra.mxu0 %v614_v28  ;;  %v590_v33 = vadd.f32 %v2028_v29, %v440_v27 }
 0x1e8   :  { %v2029_v31 = vpop.f32.mrb[10].mxu1  ;;  %2040 = vmatprep.subr.bf16.mxu0 %v615_v26  ;;  %v582_v37 = vadd.f32 %v581_v30, %v430_v16  ;;  %v700_v19 = vpop.permute.xlu1 %699 }
 0x1e9   :  { %v593_v34 = vadd.f32 %v2029_v31, %v445_v25  ;;  %v584_v35 = vpop.f32.mrb[11].mxu1 }
 0x1ea   :  { %v585_v38 = vadd.f32 %v584_v35, %v435_v15  ;;  %v695_v15 = vpop.permute.xlu0 %694 }
 0x1eb   :  { %v617_v39 = vpack.c.bf16 %v593_v34, %v590_v33  ;;  %2041 = vmatpush3.bf16.msra.mxu0 %v615_v26 }
 0x1ec   :  { %v616_v40 = vpack.c.bf16 %v585_v38, %v582_v37 }
 0x1ee   :  { %v2032_v41 = vpop.f32.mrb[12].mxu1  ;;  %2042 = vmatprep.subr.bf16.mxu0 %v616_v40  ;;  %v705_v28 = vpop.permute.xlu0 %704 }
 0x1ef   :  { %v597_v43 = vpop.f32.mrb[13].mxu1  ;;  %2043 = vmatpush3.bf16.msra.mxu0 %v616_v40  ;;  %v606_v46 = vadd.f32 %v2032_v41, %v460_v44 }
 0x1f0   :  { %v2033_v45 = vpop.f32.mrb[14].mxu1  ;;  %2044 = vmatprep.subr.bf16.mxu0 %v617_v39  ;;  %v598_v49 = vadd.f32 %v597_v43, %v450_v36 }
 0x1f1   :  { %v609_v47 = vadd.f32 %v2033_v45, %v465_v42  ;;  %v600_v48 = vpop.f32.mrb[15].mxu1 }
 0x1f2   :  { %v601_v50 = vadd.f32 %v600_v48, %v455_v32  ;;  %v710_v32 = vpop.permute.xlu1 %709  ;;  %v715_v40 = vpop.permute.xlu0 %714 }
 0x1f3   :  { %v619_v51 = vpack.c.bf16 %v609_v47, %v606_v46  ;;  %2045 = vmatpush3.bf16.msra.mxu0 %v617_v39 }
 0x1f4   :  { %v618_v52 = vpack.c.bf16 %v601_v50, %v598_v49 }
 0x1f6   :  { %2046 = vmatprep.subr.bf16.mxu0 %v618_v52  ;;  %v720_v45 = vpop.permute.xlu1 %719 }
 0x1f7   :  { %2047 = vmatpush3.bf16.msra.mxu0 %v618_v52  ;;  %v725_v52 = vpop.permute.xlu0 %724 }
 0x1f8   :  { %2048 = vmatprep.subr.bf16.mxu0 %v619_v51 }
 0x1fb   :  { %2049 = vmatpush3.bf16.msra.mxu0 %v619_v51 }
 0x1fe   :  { %2051 = vmatmul.mubr.bf16.vlgmr.msra.gmra.mrb[16].mxu0 %v2206_v53 }
 0x1ff   :  { %2054 = vmatprep.mubr.bf16.mxu0 %v2207_v54 }
 0x206   :  { %2055 = vmatmul.mubr.bf16.gmra.mrb[20].mxu0 %v2208_v55 }
 0x207   :  { %2058 = vmatprep.mubr.bf16.mxu0 %v2209_v56 }
 0x20e   :  { %2059 = vmatmul.mubr.bf16.gmra.mrb[24].mxu0 %v2210_v57  ;;  %v730_v57 = vpop.permute.xlu1 %729 }
 0x20f   :  { %2062 = vmatprep.mubr.bf16.mxu0 %v2211_v58 }
 0x216   :  { %2063 = vmatmul.mubr.bf16.gmra.mrb[28].mxu0 %v2212_v59 }
 0x2d1   :  { %v2052_v4 = vpop.f32.mrb[16].mxu0 }
 0x2d2   :  { %v823_v5 = vadd.f32 %v2052_v4, %v665_v63  ;;  %v814_v6 = vpop.f32.mrb[17].mxu0 }
 0x2d3   :  { %v815_v8 = vadd.f32 %v814_v6, %v655_v61  ;;  %v2053_v9 = vpop.f32.mrb[18].mxu0  ;;  %v2215_v6 = vld [vmem:[%s2826_s7 + $0x10] sm:$0xff]  }
 0x2d4   :  { %v826_v10 = vadd.f32 %v2053_v9, %v670_v0  ;;  %v817_v11 = vpop.f32.mrb[19].mxu0  ;;  %v879_v13 = vmax.f32 %v823_v5, 0.0  ;;  %v2214_v5 = vld [vmem:[%s2826_s7 + $0x8] sm:$0xff]  }
 0x2d5   :  { %v818_v12 = vadd.f32 %v817_v11, %v660_v62  ;;  %v877_v16 = vmax.f32 %v815_v8, 0.0  ;;  %v2217_v8 = vld [vmem:[%s2826_s7 + $0x20] sm:$0xff]   ;;  %v2218_v9 = vld [vmem:[%s2826_s7 + $0x28] sm:$0xff]   ;;  %v2220_v11 = vld [vmem:[%s2826_s7 + $0x38] sm:$0xff]  }
 0x2d6   :  { %v880_v14 = vmax.f32 %v826_v10, 0.0  ;;  %v2219_v10 = vld [vmem:[%s2826_s7 + $0x30] sm:$0xff]  }
 0x2d7   :  { %v878_v17 = vmax.f32 %v818_v12, 0.0  ;;  %v2221_v12 = vld [vmem:[%s2828_s9] sm:$0xff]  }
 0x2d8   :  { %v894_v18 = vpack.c.bf16 %v880_v14, %v879_v13  ;;  %2114 = vmatprep.mubr.bf16.mxu0 %v2221_v12  ;;  %v936_v13 = vpop.permute.xlu0 %935  ;;  %v941_v14 = vpop.permute.xlu1 %940 }
 0x2d9   :  { %v893_v20 = vpack.c.bf16 %v878_v17, %v877_v16  ;;  %v2056_v21 = vpop.f32.mrb[20].mxu0 }
 0x2da   :  { %v839_v22 = vadd.f32 %v2056_v21, %v685_v3  ;;  %v830_v23 = vpop.f32.mrb[21].mxu0 }
 0x2db   :  { %v831_v24 = vadd.f32 %v830_v23, %v675_v1  ;;  %v2057_v25 = vpop.f32.mrb[22].mxu0  ;;  %2066 = vmatprep.subr.bf16.mxu1 %v893_v20 }
 0x2dc   :  { %v842_v26 = vadd.f32 %v2057_v25, %v690_v7  ;;  %v833_v27 = vpop.f32.mrb[23].mxu0  ;;  %2067 = vmatpush3.bf16.msra.mxu1 %v893_v20  ;;  %v883_v30 = vmax.f32 %v839_v22, 0.0  ;;  %v2216_v7 = vld [vmem:[%s2826_s7 + $0x18] sm:$0xff]   ;;  %v951_v16 = vpop.permute.xlu1 %950 }
 0x2dd   :  { %v834_v29 = vadd.f32 %v833_v27, %v680_v2  ;;  %2068 = vmatprep.subr.bf16.mxu1 %v894_v18  ;;  %v881_v33 = vmax.f32 %v831_v24, 0.0 }
 0x2de   :  { %v884_v31 = vmax.f32 %v842_v26, 0.0 }
 0x2df   :  { %v882_v34 = vmax.f32 %v834_v29, 0.0 }
 0x2e0   :  { %v896_v35 = vpack.c.bf16 %v884_v31, %v883_v30  ;;  %2069 = vmatpush3.bf16.msra.mxu1 %v894_v18  ;;  %v961_v18 = vpop.permute.xlu1 %960 }
 0x2e1   :  { %v895_v36 = vpack.c.bf16 %v882_v34, %v881_v33  ;;  %v2060_v37 = vpop.f32.mrb[24].mxu0 }
 0x2e2   :  { %v855_v38 = vadd.f32 %v2060_v37, %v705_v28  ;;  %v846_v39 = vpop.f32.mrb[25].mxu0 }
 0x2e3   :  { %v847_v41 = vadd.f32 %v846_v39, %v695_v15  ;;  %v2061_v42 = vpop.f32.mrb[26].mxu0  ;;  %2070 = vmatprep.subr.bf16.mxu1 %v895_v36  ;;  %v946_v15 = vpop.permute.xlu0 %945 }
 0x2e4   :  { %v858_v43 = vadd.f32 %v2061_v42, %v710_v32  ;;  %v849_v44 = vpop.f32.mrb[27].mxu0  ;;  %2071 = vmatpush3.bf16.msra.mxu1 %v895_v36  ;;  %v887_v47 = vmax.f32 %v855_v38, 0.0  ;;  %v971_v23 = vpop.permute.xlu1 %970 }
 0x2e5   :  { %v850_v46 = vadd.f32 %v849_v44, %v700_v19  ;;  %2072 = vmatprep.subr.bf16.mxu1 %v896_v35  ;;  %v885_v49 = vmax.f32 %v847_v41, 0.0 }
 0x2e6   :  { %v888_v48 = vmax.f32 %v858_v43, 0.0 }
 0x2e7   :  { %v886_v50 = vmax.f32 %v850_v46, 0.0  ;;  %v956_v17 = vpop.permute.xlu0 %955 }
 0x2e8   :  { %v898_v51 = vpack.c.bf16 %v888_v48, %v887_v47  ;;  %2073 = vmatpush3.bf16.msra.mxu1 %v896_v35  ;;  %v981_v35 = vpop.permute.xlu1 %980 }
 0x2e9   :  { %v897_v53 = vpack.c.bf16 %v886_v50, %v885_v49  ;;  %v2064_v54 = vpop.f32.mrb[28].mxu0 }
 0x2ea   :  { %v871_v55 = vadd.f32 %v2064_v54, %v725_v52  ;;  %v862_v56 = vpop.f32.mrb[29].mxu0 }
 0x2eb   :  { %v863_v58 = vadd.f32 %v862_v56, %v715_v40  ;;  %v2065_v59 = vpop.f32.mrb[30].mxu0  ;;  %2074 = vmatprep.subr.bf16.mxu1 %v897_v53  ;;  %v966_v19 = vpop.permute.xlu0 %965 }
 0x2ec   :  { %v874_v60 = vadd.f32 %v2065_v59, %v730_v57  ;;  %v865_v61 = vpop.f32.mrb[31].mxu0  ;;  %2075 = vmatpush3.bf16.msra.mxu1 %v897_v53  ;;  %v891_v63 = vmax.f32 %v871_v55, 0.0  ;;  %v991_v48 = vpop.permute.xlu1 %990 }
 0x2ed   :  { %v866_v62 = vadd.f32 %v865_v61, %v720_v45  ;;  %2076 = vmatprep.subr.bf16.mxu1 %v898_v51  ;;  %v889_v1 = vmax.f32 %v863_v58, 0.0 }
 0x2ee   :  { %v892_v0 = vmax.f32 %v874_v60, 0.0 }
 0x2ef   :  { %v890_v2 = vmax.f32 %v866_v62, 0.0  ;;  %v976_v31 = vpop.permute.xlu0 %975 }
 0x2f0   :  { %v900_v3 = vpack.c.bf16 %v892_v0, %v891_v63  ;;  %2077 = vmatpush3.bf16.msra.mxu1 %v898_v51  ;;  %v1001_v61 = vpop.permute.xlu1 %1000 }
 0x2f1   :  { %v899_v4 = vpack.c.bf16 %v890_v2, %v889_v1 }
 0x2f3   :  { %2078 = vmatprep.subr.bf16.mxu1 %v899_v4  ;;  %v986_v44 = vpop.permute.xlu0 %985 }
 0x2f4   :  { %2079 = vmatpush3.bf16.msra.mxu1 %v899_v4 }
 0x2f5   :  { %2080 = vmatprep.subr.bf16.mxu1 %v900_v3 }
 0x2f7   :  { %v996_v56 = vpop.permute.xlu0 %995 }
 0x2f8   :  { %2081 = vmatpush3.bf16.msra.mxu1 %v900_v3 }
 0x2fb   :  { %2083 = vmatmul.mubr.bf16.vlgmr.msra.gmra.mrb[16].mxu1 %v2214_v5  ;;  %v1006_v4 = vpop.permute.xlu0 %1005 }
 0x2fc   :  { %2086 = vmatprep.mubr.bf16.mxu1 %v2215_v6 }
 0x303   :  { %2087 = vmatmul.mubr.bf16.gmra.mrb[20].mxu1 %v2216_v7 }
 0x304   :  { %2090 = vmatprep.mubr.bf16.mxu1 %v2217_v8 }
 0x30b   :  { %2091 = vmatmul.mubr.bf16.gmra.mrb[24].mxu1 %v2218_v9  ;;  %v1011_v9 = vpop.permute.xlu1 %1010 }
 0x30c   :  { %2094 = vmatprep.mubr.bf16.mxu1 %v2219_v10 }
 0x313   :  { %2095 = vmatmul.mubr.bf16.gmra.mrb[28].mxu1 %v2220_v11 }
 0x3ce   :  { %v2084_v20 = vpop.f32.mrb[16].mxu1 }
 0x3cf   :  { %v1104_v21 = vadd.f32 %v2084_v20, %v946_v15  ;;  %v1095_v22 = vpop.f32.mrb[17].mxu1 }
 0x3d0   :  { %v1096_v24 = vadd.f32 %v1095_v22, %v936_v13  ;;  %v2085_v25 = vpop.f32.mrb[18].mxu1  ;;  %v2223_v22 = vld [vmem:[%s2828_s9 + $0x10] sm:$0xff]  }
 0x3d1   :  { %v1107_v26 = vadd.f32 %v2085_v25, %v951_v16  ;;  %v1098_v27 = vpop.f32.mrb[19].mxu1  ;;  %v1160_v29 = vmax.f32 %v1104_v21, 0.0  ;;  %v2222_v21 = vld [vmem:[%s2828_s9 + $0x8] sm:$0xff]  }
 0x3d2   :  { %v1099_v28 = vadd.f32 %v1098_v27, %v941_v14  ;;  %v1158_v32 = vmax.f32 %v1096_v24, 0.0  ;;  %v2225_v24 = vld [vmem:[%s2828_s9 + $0x20] sm:$0xff]   ;;  %v2226_v25 = vld [vmem:[%s2828_s9 + $0x28] sm:$0xff]   ;;  %v2228_v27 = vld [vmem:[%s2828_s9 + $0x38] sm:$0xff]  }
 0x3d3   :  { %v1161_v30 = vmax.f32 %v1107_v26, 0.0  ;;  %v2227_v26 = vld [vmem:[%s2828_s9 + $0x30] sm:$0xff]  }
 0x3d4   :  { %v1159_v33 = vmax.f32 %v1099_v28, 0.0  ;;  %v2229_v28 = vld [vmem:[%s2830_s11] sm:$0xff]  }
 0x3d5   :  { %v1175_v34 = vpack.c.bf16 %v1161_v30, %v1160_v29  ;;  %2146 = vmatprep.mubr.bf16.mxu1 %v2229_v28  ;;  %v1217_v29 = vpop.permute.xlu0 %1216  ;;  %v1222_v30 = vpop.permute.xlu1 %1221 }
 0x3d6   :  { %v1174_v36 = vpack.c.bf16 %v1159_v33, %v1158_v32  ;;  %v2088_v37 = vpop.f32.mrb[20].mxu1 }
 0x3d7   :  { %v1120_v38 = vadd.f32 %v2088_v37, %v966_v19  ;;  %v1111_v39 = vpop.f32.mrb[21].mxu1 }
 0x3d8   :  { %v1112_v40 = vadd.f32 %v1111_v39, %v956_v17  ;;  %v2089_v41 = vpop.f32.mrb[22].mxu1  ;;  %2098 = vmatprep.subr.bf16.mxu0 %v1174_v36 }
 0x3d9   :  { %v1123_v42 = vadd.f32 %v2089_v41, %v971_v23  ;;  %v1114_v43 = vpop.f32.mrb[23].mxu1  ;;  %2099 = vmatpush3.bf16.msra.mxu0 %v1174_v36  ;;  %v1164_v46 = vmax.f32 %v1120_v38, 0.0  ;;  %v2224_v23 = vld [vmem:[%s2828_s9 + $0x18] sm:$0xff]   ;;  %v1232_v32 = vpop.permute.xlu1 %1231 }
 0x3da   :  { %v1115_v45 = vadd.f32 %v1114_v43, %v961_v18  ;;  %2100 = vmatprep.subr.bf16.mxu0 %v1175_v34  ;;  %v1162_v49 = vmax.f32 %v1112_v40, 0.0 }
 0x3db   :  { %v1165_v47 = vmax.f32 %v1123_v42, 0.0 }
 0x3dc   :  { %v1163_v50 = vmax.f32 %v1115_v45, 0.0 }
 0x3dd   :  { %v1177_v51 = vpack.c.bf16 %v1165_v47, %v1164_v46  ;;  %2101 = vmatpush3.bf16.msra.mxu0 %v1175_v34  ;;  %v1242_v34 = vpop.permute.xlu1 %1241 }
 0x3de   :  { %v1176_v52 = vpack.c.bf16 %v1163_v50, %v1162_v49  ;;  %v2092_v53 = vpop.f32.mrb[24].mxu1 }
 0x3df   :  { %v1136_v54 = vadd.f32 %v2092_v53, %v986_v44  ;;  %v1127_v55 = vpop.f32.mrb[25].mxu1 }
 0x3e0   :  { %v1128_v57 = vadd.f32 %v1127_v55, %v976_v31  ;;  %v2093_v58 = vpop.f32.mrb[26].mxu1  ;;  %2102 = vmatprep.subr.bf16.mxu0 %v1176_v52  ;;  %v1227_v31 = vpop.permute.xlu0 %1226 }
 0x3e1   :  { %v1139_v59 = vadd.f32 %v2093_v58, %v991_v48  ;;  %v1130_v60 = vpop.f32.mrb[27].mxu1  ;;  %2103 = vmatpush3.bf16.msra.mxu0 %v1176_v52  ;;  %v1168_v63 = vmax.f32 %v1136_v54, 0.0  ;;  %v1252_v39 = vpop.permute.xlu1 %1251 }
 0x3e2   :  { %v1131_v62 = vadd.f32 %v1130_v60, %v981_v35  ;;  %2104 = vmatprep.subr.bf16.mxu0 %v1177_v51  ;;  %v1166_v1 = vmax.f32 %v1128_v57, 0.0 }
 0x3e3   :  { %v1169_v0 = vmax.f32 %v1139_v59, 0.0 }
 0x3e4   :  { %v1167_v2 = vmax.f32 %v1131_v62, 0.0  ;;  %v1237_v33 = vpop.permute.xlu0 %1236 }
 0x3e5   :  { %v1179_v3 = vpack.c.bf16 %v1169_v0, %v1168_v63  ;;  %2105 = vmatpush3.bf16.msra.mxu0 %v1177_v51  ;;  %v1262_v51 = vpop.permute.xlu1 %1261 }
 0x3e6   :  { %v1178_v5 = vpack.c.bf16 %v1167_v2, %v1166_v1  ;;  %v2096_v6 = vpop.f32.mrb[28].mxu1 }
 0x3e7   :  { %v1152_v7 = vadd.f32 %v2096_v6, %v1006_v4  ;;  %v1143_v8 = vpop.f32.mrb[29].mxu1 }
 0x3e8   :  { %v1144_v10 = vadd.f32 %v1143_v8, %v996_v56  ;;  %v2097_v11 = vpop.f32.mrb[30].mxu1  ;;  %2106 = vmatprep.subr.bf16.mxu0 %v1178_v5  ;;  %v1247_v35 = vpop.permute.xlu0 %1246 }
 0x3e9   :  { %v1155_v12 = vadd.f32 %v2097_v11, %v1011_v9  ;;  %v1146_v13 = vpop.f32.mrb[31].mxu1  ;;  %2107 = vmatpush3.bf16.msra.mxu0 %v1178_v5  ;;  %v1172_v15 = vmax.f32 %v1152_v7, 0.0  ;;  %v1272_v0 = vpop.permute.xlu1 %1271 }
 0x3ea   :  { %v1147_v14 = vadd.f32 %v1146_v13, %v1001_v61  ;;  %2108 = vmatprep.subr.bf16.mxu0 %v1179_v3  ;;  %v1170_v17 = vmax.f32 %v1144_v10, 0.0 }
 0x3eb   :  { %v1173_v16 = vmax.f32 %v1155_v12, 0.0 }
 0x3ec   :  { %v1171_v18 = vmax.f32 %v1147_v14, 0.0  ;;  %v1257_v47 = vpop.permute.xlu0 %1256 }
 0x3ed   :  { %v1181_v19 = vpack.c.bf16 %v1173_v16, %v1172_v15  ;;  %2109 = vmatpush3.bf16.msra.mxu0 %v1179_v3  ;;  %v1282_v13 = vpop.permute.xlu1 %1281 }
 0x3ee   :  { %v1180_v20 = vpack.c.bf16 %v1171_v18, %v1170_v17 }
 0x3f0   :  { %2110 = vmatprep.subr.bf16.mxu0 %v1180_v20  ;;  %v1267_v60 = vpop.permute.xlu0 %1266 }
 0x3f1   :  { %2111 = vmatpush3.bf16.msra.mxu0 %v1180_v20 }
 0x3f2   :  { %2112 = vmatprep.subr.bf16.mxu0 %v1181_v19 }
 0x3f4   :  { %v1277_v8 = vpop.permute.xlu0 %1276 }
 0x3f5   :  { %2113 = vmatpush3.bf16.msra.mxu0 %v1181_v19 }
 0x3f8   :  { %2115 = vmatmul.mubr.bf16.vlgmr.msra.gmra.mrb[32].mxu0 %v2222_v21  ;;  %v1287_v20 = vpop.permute.xlu0 %1286 }
 0x3f9   :  { %2118 = vmatprep.mubr.bf16.mxu0 %v2223_v22 }
 0x400   :  { %2119 = vmatmul.mubr.bf16.gmra.mrb[36].mxu0 %v2224_v23 }
 0x401   :  { %2122 = vmatprep.mubr.bf16.mxu0 %v2225_v24 }
 0x408   :  { %2123 = vmatmul.mubr.bf16.gmra.mrb[40].mxu0 %v2226_v25  ;;  %v1292_v25 = vpop.permute.xlu1 %1291 }
 0x409   :  { %2126 = vmatprep.mubr.bf16.mxu0 %v2227_v26 }
 0x410   :  { %2127 = vmatmul.mubr.bf16.gmra.mrb[44].mxu0 %v2228_v27 }
 0x4cb   :  { %v2116_v36 = vpop.f32.mrb[32].mxu0 }
 0x4cc   :  { %v1385_v37 = vadd.f32 %v2116_v36, %v1227_v31  ;;  %v1376_v38 = vpop.f32.mrb[33].mxu0 }
 0x4cd   :  { %v1377_v40 = vadd.f32 %v1376_v38, %v1217_v29  ;;  %v2117_v41 = vpop.f32.mrb[34].mxu0  ;;  %v2231_v38 = vld [vmem:[%s2830_s11 + $0x10] sm:$0xff]  }
 0x4ce   :  { %v1388_v42 = vadd.f32 %v2117_v41, %v1232_v32  ;;  %v1379_v43 = vpop.f32.mrb[35].mxu0  ;;  %v1441_v45 = vmax.f32 %v1385_v37, 0.0  ;;  %v2230_v37 = vld [vmem:[%s2830_s11 + $0x8] sm:$0xff]  }
 0x4cf   :  { %v1380_v44 = vadd.f32 %v1379_v43, %v1222_v30  ;;  %v1439_v48 = vmax.f32 %v1377_v40, 0.0  ;;  %v2233_v40 = vld [vmem:[%s2830_s11 + $0x20] sm:$0xff]   ;;  %v2234_v41 = vld [vmem:[%s2830_s11 + $0x28] sm:$0xff]   ;;  %v2236_v43 = vld [vmem:[%s2830_s11 + $0x38] sm:$0xff]  }
 0x4d0   :  { %v1442_v46 = vmax.f32 %v1388_v42, 0.0  ;;  %v2235_v42 = vld [vmem:[%s2830_s11 + $0x30] sm:$0xff]  }
 0x4d1   :  { %v1440_v49 = vmax.f32 %v1380_v44, 0.0  ;;  %v2266_v44 = vmov 0.0  }
 0x4d2   :  { %v1456_v50 = vpack.c.bf16 %v1442_v46, %v1441_v45  ;;  %2162 = vmatprep.subr.bf16.mxu0 %v2266_v44  ;;  %2178 = vmatprep.mubr.msk.bf16.mxu0 %vm2267_vm2, %v2266_v44  ;;  %v1498_v45 = vpop.permute.xlu0 %1497  ;;  %v1503_v46 = vpop.permute.xlu1 %1502 }
 0x4d3   :  { %v1455_v52 = vpack.c.bf16 %v1440_v49, %v1439_v48  ;;  %v2120_v53 = vpop.f32.mrb[36].mxu0 }
 0x4d4   :  { %v1401_v54 = vadd.f32 %v2120_v53, %v1247_v35  ;;  %v1392_v55 = vpop.f32.mrb[37].mxu0 }
 0x4d5   :  { %v1393_v56 = vadd.f32 %v1392_v55, %v1237_v33  ;;  %v2121_v57 = vpop.f32.mrb[38].mxu0  ;;  %2130 = vmatprep.subr.bf16.mxu1 %v1455_v52 }
 0x4d6   :  { %v1404_v58 = vadd.f32 %v2121_v57, %v1252_v39  ;;  %v1395_v59 = vpop.f32.mrb[39].mxu0  ;;  %2131 = vmatpush3.bf16.msra.mxu1 %v1455_v52  ;;  %v1445_v62 = vmax.f32 %v1401_v54, 0.0  ;;  %v2232_v39 = vld [vmem:[%s2830_s11 + $0x18] sm:$0xff]   ;;  %v1513_v48 = vpop.permute.xlu1 %1512 }
 0x4d7   :  { %v1396_v61 = vadd.f32 %v1395_v59, %v1242_v34  ;;  %2132 = vmatprep.subr.bf16.mxu1 %v1456_v50  ;;  %v1443_v1 = vmax.f32 %v1393_v56, 0.0 }
 0x4d8   :  { %v1446_v63 = vmax.f32 %v1404_v58, 0.0 }
 0x4d9   :  { %v1444_v2 = vmax.f32 %v1396_v61, 0.0 }
 0x4da   :  { %v1458_v3 = vpack.c.bf16 %v1446_v63, %v1445_v62  ;;  %2133 = vmatpush3.bf16.msra.mxu1 %v1456_v50  ;;  %v1523_v50 = vpop.permute.xlu1 %1522 }
 0x4db   :  { %v1457_v4 = vpack.c.bf16 %v1444_v2, %v1443_v1  ;;  %v2124_v5 = vpop.f32.mrb[40].mxu0 }
 0x4dc   :  { %v1417_v6 = vadd.f32 %v2124_v5, %v1267_v60  ;;  %v1408_v7 = vpop.f32.mrb[41].mxu0 }
 0x4dd   :  { %v1409_v9 = vadd.f32 %v1408_v7, %v1257_v47  ;;  %v2125_v10 = vpop.f32.mrb[42].mxu0  ;;  %2134 = vmatprep.subr.bf16.mxu1 %v1457_v4  ;;  %v1508_v47 = vpop.permute.xlu0 %1507 }
 0x4de   :  { %v1420_v11 = vadd.f32 %v2125_v10, %v1272_v0  ;;  %v1411_v12 = vpop.f32.mrb[43].mxu0  ;;  %2135 = vmatpush3.bf16.msra.mxu1 %v1457_v4  ;;  %v1449_v15 = vmax.f32 %v1417_v6, 0.0  ;;  %v1533_v55 = vpop.permute.xlu1 %1532 }
 0x4df   :  { %v1412_v14 = vadd.f32 %v1411_v12, %v1262_v51  ;;  %2136 = vmatprep.subr.bf16.mxu1 %v1458_v3  ;;  %v1447_v17 = vmax.f32 %v1409_v9, 0.0 }
 0x4e0   :  { %v1450_v16 = vmax.f32 %v1420_v11, 0.0 }
 0x4e1   :  { %v1448_v18 = vmax.f32 %v1412_v14, 0.0  ;;  %v1518_v49 = vpop.permute.xlu0 %1517 }
 0x4e2   :  { %v1460_v19 = vpack.c.bf16 %v1450_v16, %v1449_v15  ;;  %2137 = vmatpush3.bf16.msra.mxu1 %v1458_v3  ;;  %v1543_v3 = vpop.permute.xlu1 %1542 }
 0x4e3   :  { %v1459_v21 = vpack.c.bf16 %v1448_v18, %v1447_v17  ;;  %v2128_v22 = vpop.f32.mrb[44].mxu0 }
 0x4e4   :  { %v1433_v23 = vadd.f32 %v2128_v22, %v1287_v20  ;;  %v1424_v24 = vpop.f32.mrb[45].mxu0 }
 0x4e5   :  { %v1425_v26 = vadd.f32 %v1424_v24, %v1277_v8  ;;  %v2129_v27 = vpop.f32.mrb[46].mxu0  ;;  %2138 = vmatprep.subr.bf16.mxu1 %v1459_v21  ;;  %v1528_v51 = vpop.permute.xlu0 %1527 }
 0x4e6   :  { %v1436_v28 = vadd.f32 %v2129_v27, %v1292_v25  ;;  %v1427_v29 = vpop.f32.mrb[47].mxu0  ;;  %2139 = vmatpush3.bf16.msra.mxu1 %v1459_v21  ;;  %v1453_v31 = vmax.f32 %v1433_v23, 0.0  ;;  %v1553_v16 = vpop.permute.xlu1 %1552 }
 0x4e7   :  { %v1428_v30 = vadd.f32 %v1427_v29, %v1282_v13  ;;  %2140 = vmatprep.subr.bf16.mxu1 %v1460_v19  ;;  %v1451_v33 = vmax.f32 %v1425_v26, 0.0 }
 0x4e8   :  { %v1454_v32 = vmax.f32 %v1436_v28, 0.0 }
 0x4e9   :  { %v1452_v34 = vmax.f32 %v1428_v30, 0.0  ;;  %v1538_v63 = vpop.permute.xlu0 %1537 }
 0x4ea   :  { %v1462_v35 = vpack.c.bf16 %v1454_v32, %v1453_v31  ;;  %2141 = vmatpush3.bf16.msra.mxu1 %v1460_v19  ;;  %v1563_v29 = vpop.permute.xlu1 %1562 }
 0x4eb   :  { %v1461_v36 = vpack.c.bf16 %v1452_v34, %v1451_v33 }
 0x4ed   :  { %2142 = vmatprep.subr.bf16.mxu1 %v1461_v36  ;;  %v1548_v12 = vpop.permute.xlu0 %1547 }
 0x4ee   :  { %2143 = vmatpush3.bf16.msra.mxu1 %v1461_v36 }
 0x4ef   :  { %2144 = vmatprep.subr.bf16.mxu1 %v1462_v35 }
 0x4f1   :  { %v1558_v24 = vpop.permute.xlu0 %1557 }
 0x4f2   :  { %2145 = vmatpush3.bf16.msra.mxu1 %v1462_v35 }
 0x4f5   :  { %2147 = vmatmul.mubr.bf16.vlgmr.msra.gmra.mrb[32].mxu1 %v2230_v37  ;;  %v1568_v36 = vpop.permute.xlu0 %1567 }
 0x4f6   :  { %2150 = vmatprep.mubr.bf16.mxu1 %v2231_v38 }
 0x4fd   :  { %2151 = vmatmul.mubr.bf16.gmra.mrb[36].mxu1 %v2232_v39 }
 0x4fe   :  { %2154 = vmatprep.mubr.bf16.mxu1 %v2233_v40 }
 0x505   :  { %2155 = vmatmul.mubr.bf16.gmra.mrb[40].mxu1 %v2234_v41  ;;  %v1573_v41 = vpop.permute.xlu1 %1572 }
 0x506   :  { %2158 = vmatprep.mubr.bf16.mxu1 %v2235_v42 }
 0x50d   :  { %2159 = vmatmul.mubr.bf16.gmra.mrb[44].mxu1 %v2236_v43 }
 0x5c8   :  { %v2148_v52 = vpop.f32.mrb[32].mxu1 }
 0x5c9   :  { %v1666_v53 = vadd.f32 %v2148_v52, %v1508_v47  ;;  %v1657_v54 = vpop.f32.mrb[33].mxu1 }
 0x5ca   :  { %v1658_v56 = vadd.f32 %v1657_v54, %v1498_v45  ;;  %v2149_v57 = vpop.f32.mrb[34].mxu1  ;;  %v1744_v54 = vld [vmem:[%s2832_s13] sm:$0x1]  ;;  %s2268_s13 = smov [#allocation2]  }
 0x5cb   :  { %v1669_v58 = vadd.f32 %v2149_v57, %v1513_v48  ;;  %v1660_v59 = vpop.f32.mrb[35].mxu1  ;;  %v1722_v61 = vmax.f32 %v1666_v53, 0.0  ;;  %s1822_s4 = sshll.u32 %s2268_s13, 4  ;;  %s1823_s4 = int_to_ptr.vmem [resolvable:$true] %s1822_s4 }
 0x5cc   :  { %v1661_v60 = vadd.f32 %v1660_v59, %v1503_v46  ;;  %v1720_v0 = vmax.f32 %v1658_v56, 0.0  ;;  %s2241_s12 = scalar_lea.vmem %s1823_s4, 32  ;;  %p2246_p1 = scmp.lt.s32.totalorder %s1823_s4, %s1823_s4 }
 0x5cd   :  { %v1723_v62 = vmax.f32 %v1669_v58, 0.0  ;;  %p2242_p0 = scmp.ne.s32.totalorder %s1823_s4, %s2241_s12  ;;  %p2247_p2 = scmp.lt.s32.totalorder %s2241_s12, %s2241_s12 }
 0x5ce   :  { %v1721_v1 = vmax.f32 %v1661_v60, 0.0 }
 0x5cf   :  { %v1737_v2 = vpack.c.bf16 %v1723_v62, %v1722_v61  ;;  %p2248_p3 = por %p2247_p2, %p2246_p1 }
 0x5d0   :  { %v1736_v4 = vpack.c.bf16 %v1721_v1, %v1720_v0  ;;  %v2152_v5 = vpop.f32.mrb[36].mxu1 }
 0x5d1   :  { %v1682_v6 = vadd.f32 %v2152_v5, %v1528_v51  ;;  %v1673_v7 = vpop.f32.mrb[37].mxu1  ;;  %v1791_v5 = vlaneseq  ;;  %p2249_p4 = pnand %p2248_p3, %p2242_p0 }
 0x5d2   :  { %v1674_v8 = vadd.f32 %v1673_v7, %v1518_v49  ;;  %v2153_v9 = vpop.f32.mrb[38].mxu1  ;;  %2163 = vmatpush3.bf16.msra.mxu0 %v1736_v4 }
 0x5d3   :  { %v1685_v10 = vadd.f32 %v2153_v9, %v1533_v55  ;;  %v1676_v11 = vpop.f32.mrb[39].mxu1  ;;  %2164 = vmatprep.subr.bf16.mxu0 %v2266_v44  ;;  %v1726_v14 = vmax.f32 %v1682_v6, 0.0  ;;  %v1749_v55 = vpop.permute.xlu0 %1748 }
 0x5d4   :  { %v1677_v13 = vadd.f32 %v1676_v11, %v1523_v50  ;;  %v1724_v17 = vmax.f32 %v1674_v8, 0.0 }
 0x5d5   :  { %v1727_v15 = vmax.f32 %v1685_v10, 0.0  ;;  %v1792_v10 = vshrl.u32 %v1791_v5, 7 }
 0x5d6   :  { %v1725_v18 = vmax.f32 %v1677_v13, 0.0  ;;  %2165 = vmatpush3.bf16.msra.mxu0 %v1737_v2 }
 0x5d7   :  { %v1739_v19 = vpack.c.bf16 %v1727_v15, %v1726_v14  ;;  %2166 = vmatprep.subr.bf16.mxu0 %v2266_v44  ;;  %vm1813_vm5 = vcmp.lt.s32.totalorder %v1792_v10, 1 }
 0x5d8   :  { %v1738_v20 = vpack.c.bf16 %v1725_v18, %v1724_v17  ;;  %v2156_v21 = vpop.f32.mrb[40].mxu1 }
 0x5d9   :  { %v1698_v22 = vadd.f32 %v2156_v21, %v1548_v12  ;;  %v1689_v23 = vpop.f32.mrb[41].mxu1 }
 0x5da   :  { %v1690_v25 = vadd.f32 %v1689_v23, %v1538_v63  ;;  %v2157_v26 = vpop.f32.mrb[42].mxu1  ;;  %2167 = vmatpush3.bf16.msra.mxu0 %v1738_v20 }
 0x5db   :  { %v1701_v27 = vadd.f32 %v2157_v26, %v1553_v16  ;;  %v1692_v28 = vpop.f32.mrb[43].mxu1  ;;  %2168 = vmatprep.subr.bf16.mxu0 %v2266_v44  ;;  %v1730_v31 = vmax.f32 %v1698_v22, 0.0 }
 0x5dc   :  { %v1693_v30 = vadd.f32 %v1692_v28, %v1543_v3  ;;  %v1728_v33 = vmax.f32 %v1690_v25, 0.0 }
 0x5dd   :  { %v1731_v32 = vmax.f32 %v1701_v27, 0.0 }
 0x5de   :  { %v1729_v34 = vmax.f32 %v1693_v30, 0.0  ;;  %2169 = vmatpush3.bf16.msra.mxu0 %v1739_v19 }
 0x5df   :  { %v1741_v35 = vpack.c.bf16 %v1731_v32, %v1730_v31  ;;  %2170 = vmatprep.subr.bf16.mxu0 %v2266_v44 }
 0x5e0   :  { %v1740_v37 = vpack.c.bf16 %v1729_v34, %v1728_v33  ;;  %v2160_v38 = vpop.f32.mrb[44].mxu1 }
 0x5e1   :  { %v1714_v39 = vadd.f32 %v2160_v38, %v1568_v36  ;;  %v1705_v40 = vpop.f32.mrb[45].mxu1 }
 0x5e2   :  { %v1706_v42 = vadd.f32 %v1705_v40, %v1558_v24  ;;  %v2161_v43 = vpop.f32.mrb[46].mxu1  ;;  %2171 = vmatpush3.bf16.msra.mxu0 %v1740_v37 }
 0x5e3   :  { %v1717_v45 = vadd.f32 %v2161_v43, %v1573_v41  ;;  %v1708_v46 = vpop.f32.mrb[47].mxu1  ;;  %2172 = vmatprep.subr.bf16.mxu0 %v2266_v44  ;;  %v1734_v48 = vmax.f32 %v1714_v39, 0.0 }
 0x5e4   :  { %v1709_v47 = vadd.f32 %v1708_v46, %v1563_v29  ;;  %v1732_v50 = vmax.f32 %v1706_v42, 0.0 }
 0x5e5   :  { %v1735_v49 = vmax.f32 %v1717_v45, 0.0 }
 0x5e6   :  { %v1733_v51 = vmax.f32 %v1709_v47, 0.0  ;;  %2173 = vmatpush3.bf16.msra.mxu0 %v1741_v35 }
 0x5e7   :  { %v1743_v52 = vpack.c.bf16 %v1735_v49, %v1734_v48  ;;  %2174 = vmatprep.subr.bf16.mxu0 %v2266_v44 }
 0x5e8   :  { %v1742_v53 = vpack.c.bf16 %v1733_v51, %v1732_v50 }
 0x5ea   :  { %2175 = vmatpush3.bf16.msra.mxu0 %v1742_v53 }
 0x5eb   :  { %2176 = vmatprep.subr.bf16.mxu0 %v2266_v44 }
 0x5ee   :  { %2177 = vmatpush3.bf16.msra.mxu0 %v1743_v52 }
 0x5f1   :  { %2179 = vmatmul.mubr.bf16.vlgmr.msra.gmra.mrb[48].mxu0 %v1744_v54 }
 0x6c4   :  { %v1785_v56 = vpop.f32.mrb[48].mxu0 }
 0x6c5   :  { %v1786_v57 = vadd.f32 %v1785_v56, %v1749_v55  ;;  %v2180_v58 = vpop.f32.mrb[49].mxu0 }
 0x6c6   :  { %v1788_v59 = vpop.f32.mrb[50].mxu0 }
 0x6c7   :  { %v1796_v60 = vand.u32 2147483647, %v1786_v57  ;;  %v2181_v61 = vpop.f32.mrb[51].mxu0  ;;  %v1793_v8 = vmax.f32 %v1786_v57, 0.0  ;;  %vm1794_vm4 = vcmp.ne.f32.partialorder %v1786_v57, %v1786_v57 }
 0x6c9   :  { %v1797_v62 = vsub.f32 0.0, %v1796_v60 }
 0x6cb   :  { %v1798_v63 = vmul.f32 1.442695, %v1797_v62 }
 0x6cd   :  { %2237 = vpow2.f32 %v1798_v63 }
 0x6d7   :  { %v2238_v0 = vpop.eup %2237 }
 0x6d8   :  { %v1800_v1 = vadd.f32 1.0, %v2238_v0  ;;  %v1803_v44 = vmul.f32 -0.5, %v2238_v0  ;;  %v1806_v3 = vand.u32 2147483647, %v2238_v0 }
 0x6da   :  { %2239 = vlog2.f32 %v1800_v1  ;;  %v1804_v2 = vadd.f32 1.0, %v1803_v44  ;;  %vm1807_vm3 = vcmp.lt.f32.partialorder %v1806_v3, 0.0004427343 }
 0x6dc   :  { %v1805_v7 = vmul.f32 %v2238_v0, %v1804_v2 }
 0x6e4   :  { %v2240_v4 = vpop.eup %2239 }
 0x6e5   :  { %v1802_v6 = vmul.f32 0.6931472, %v2240_v4 }
 0x6e7   :  { %v1808_v9 = vsel %vm1807_vm3, %v1805_v7, %v1802_v6 }
 0x6e8   :  { %v1809_v11 = vadd.f32 %v1808_v9, %v1793_v8 }
 0x6ea   :  { %v1810_v12 = vsel %vm1794_vm4, %v1786_v57, %v1809_v11 }
 0x6eb   :  { %v1811_v13 = vmul.f32 0.99, %v1810_v12 }
 0x6ed   :  { %v1812_v14 = vadd.f32 0.01, %v1811_v13 }
 0x6ef   :  { %v1814_v15 = vsel %vm1813_vm5, %v1786_v57, %v1812_v14 }
 0x6f0   :  { %1815 = vst [vmem:[#allocation2] sm:$0x3] %v1814_v15 }
 0x6f1   :  { %2252 = shalt.err (!%p2249_p4)
}
 0x6f2   :  { %s2253_s1 = scalar_lea.hbm %s2834_s15, 32 }
 0x6f3   :  { %p2254_p5 = scmp.ne.s32.totalorder %s2834_s15, %s2253_s1  ;;  %p2257_p6 = scmp.lt.u32.totalorder %s2253_s1, %s2834_s15 }
 0x6f5   :  { %p2259_p7 = pnand %p2257_p6, %p2254_p5 }
 0x6f7   :  { %2262 = shalt.err (!%p2259_p7)
}
 0x6f8   :  { %1825 = dma.vmem_to_hbm [thread:$0]  %s1823_s4, 32, %s2834_s15, [#allocation3]  }
 0x6f9   :  { %2263 = dma.done.wait [#allocation3], 32  }
 0x6fa   :  { %2264 = vsyncadd [#allocation3], 4294967264 }
 0x6fb   :  { %1829 = vsyncpa [#allocation3], 1 }

</bundles_post_ra>
